<compile_context>
chip_gen: v6e
topology: v6e:2x2x1
jax: 0.10.0
libtpu: 0.0.40
codegen_flags: <defaults>
</compile_context>

<pallas_src>
import jax
import jax.numpy as jnp
from jax.experimental import pallas as pl
from jax.experimental.pallas import tpu as pltpu

N_FEATURES = 36          # len(CFG.featuresBig) = 30 + 6
HIDDEN = (100, 70, 40, 20, 1)


def mlp_kernel(x_ref,
               w1_ref, b1_ref,
               w2_ref, b2_ref,
               w3_ref, b3_ref,
               w4_ref, b4_ref,
               w5_ref, b5_ref,
               o_ref):
    x = x_ref[...]                                                       # (tb, 36)

    # fc1..fc4 on the MXU with f32 accumulation, ReLU on the VPU.
    h = jnp.dot(x, w1_ref[...], preferred_element_type=jnp.float32) + b1_ref[...]
    h = jnp.maximum(h, 0.0)                                              # relu(fc1)
    # nn.Dropout(0.1) -> identity at inference

    h = jnp.dot(h, w2_ref[...], preferred_element_type=jnp.float32) + b2_ref[...]
    h = jnp.maximum(h, 0.0)                                              # relu(fc2)
    # nn.Dropout(0.1) -> identity at inference

    h = jnp.dot(h, w3_ref[...], preferred_element_type=jnp.float32) + b3_ref[...]
    h = jnp.maximum(h, 0.0)                                              # relu(fc3)

    h = jnp.dot(h, w4_ref[...], preferred_element_type=jnp.float32) + b4_ref[...]
    h = jnp.maximum(h, 0.0)                                              # relu(fc4)

    # fc5 (20 -> 1) on VPU/XLU: broadcast-multiply + lane reduction.  Keeps the
    # MXU free and feeds the lane-dense output store directly.
    w5_row = w5_ref[...].reshape(1, -1)                                  # (1, 20)
    y = jnp.sum(h * w5_row, axis=-1, keepdims=True) + b5_ref[...]        # (tb, 1)

    # Lane-dense store: (tb, 1) -> (1, 1, tb) so the write is an unmasked vst
    # across full 128-lane groups instead of tb masked single-lane stores.
    o_ref[...] = y.reshape(o_ref.shape).astype(o_ref.dtype)


def neural_network_forward(x, params, *, tb=None):
    """x: (B, 36) float32. params: list of (W_(in,out), b_(1,out)). Returns (B, 1)."""
    B, F = x.shape
    assert F == N_FEATURES

    if tb is None:
        # Lane-aligned, VMEM-friendly tile; aim for >=2 grid steps (megacore on v7x).
        tb = int(min(4096, max(128, pl.next_power_of_2(pl.cdiv(B, 2)))))

    num_tiles = pl.cdiv(B, tb)
    b_pad = num_tiles * tb
    if b_pad != B:
        x = jnp.pad(x, ((0, b_pad - B), (0, 0)))                         # zero-pad batch

    # Per-batch-tile block for x; weights/biases passed as full grid-invariant
    # blocks (constant index_map -> DMA'd once, kept resident across grid steps).
    in_specs = [pl.BlockSpec((tb, F), lambda i: (i, 0))]
    flat_params = []
    for (w, b) in params:
        in_specs.append(pl.BlockSpec(w.shape, lambda i: (0, 0)))
        in_specs.append(pl.BlockSpec(b.shape, lambda i: (0, 0)))
        flat_params += [w, b]

    # Lane-dense output: (num_tiles, 1, tb), one (1, 1, tb) block per grid step.
    out_spec = pl.BlockSpec((1, 1, tb), lambda i: (i, 0, 0))

    out = pl.pallas_call(
        mlp_kernel,
        out_shape=jax.ShapeDtypeStruct((num_tiles, 1, tb), jnp.float32),
        grid=(num_tiles,),
        in_specs=in_specs,
        out_specs=out_spec,
        compiler_params=pltpu.CompilerParams(
            dimension_semantics=("parallel",)),
    )(x, *flat_params)

    return out.reshape(b_pad, 1)[:B]


def init_params(key):
    """Deterministic init mimicking PyTorch Linear default: U(-1/sqrt(fan_in), +1/sqrt(fan_in))."""
    dims = [N_FEATURES, *HIDDEN]       # 36 -> 100 -> 70 -> 40 -> 20 -> 1
    params = []
    for d_in, d_out in zip(dims[:-1], dims[1:]):
        key, kw, kb = jax.random.split(key, 3)
        bound = 1.0 / (d_in ** 0.5)
        w = jax.random.uniform(kw, (d_in, d_out), jnp.float32, -bound, bound)
        b = jax.random.uniform(kb, (1, d_out), jnp.float32, -bound, bound)
        params.append((w, b))
    return params


def reference_forward(x, params):
    h = x
    for i, (w, b) in enumerate(params):
        h = jnp.dot(h, w, precision=jax.lax.Precision.HIGHEST) + b
        if i < len(params) - 1:
            h = jnp.maximum(h, 0.0)
    return h


if __name__ == "__main__":
    key = jax.random.PRNGKey(0)
    key, kx, kx2 = jax.random.split(key, 3)
    params = init_params(key)

    # Main check: CFG.batch_size = 512 -> tb=256, grid of 2 (both v7x TCs busy).
    B = 512
    x = jax.random.normal(kx, (B, N_FEATURES), jnp.float32)
    out = jax.block_until_ready(neural_network_forward(x, params))
    ref = reference_forward(x, params)
    assert out.shape == (B, 1)
    assert jnp.allclose(out, ref, atol=1e-4, rtol=1e-4)

    # Small / non-tile-multiple batch exercises the zero-padding path.
    B2 = 37
    x2 = jax.random.normal(kx2, (B2, N_FEATURES), jnp.float32)
    out2 = jax.block_until_ready(neural_network_forward(x2, params))
    ref2 = reference_forward(x2, params)
    assert out2.shape == (B2, 1)
    assert jnp.allclose(out2, ref2, atol=1e-4, rtol=1e-4)

    print("KERNEL_OK")
</pallas_src>

<mosaic_0001>
module attributes {stable_mosaic.version = 11 : i64} {
  func.func @mlp_kernel(%arg0: i32, %arg1: memref<256x36xf32, #tpu.memory_space<vmem>>, %arg2: memref<36x100xf32, #tpu.memory_space<vmem>>, %arg3: memref<1x100xf32, #tpu.memory_space<vmem>>, %arg4: memref<100x70xf32, #tpu.memory_space<vmem>>, %arg5: memref<1x70xf32, #tpu.memory_space<vmem>>, %arg6: memref<70x40xf32, #tpu.memory_space<vmem>>, %arg7: memref<1x40xf32, #tpu.memory_space<vmem>>, %arg8: memref<40x20xf32, #tpu.memory_space<vmem>>, %arg9: memref<1x20xf32, #tpu.memory_space<vmem>>, %arg10: memref<20x1xf32, #tpu.memory_space<vmem>>, %arg11: memref<1x1xf32, #tpu.memory_space<vmem>>, %arg12: memref<1x1x256xf32, #tpu.memory_space<vmem>>) attributes {dimension_semantics = [#tpu.dimension_semantics<parallel>], iteration_bounds = array<i64: 2>, scalar_prefetch = 0 : i64, scratch_operands = 0 : i64, tpu.core_type = #tpu.core_type<tc>, window_params = [{transform_indices = @transform_0, window_bounds = array<i64: 256, 36>}, {pipeline_mode = #tpu.pipeline_mode<synchronous>, transform_indices = @transform_1, window_bounds = array<i64: 36, 100>}, {pipeline_mode = #tpu.pipeline_mode<synchronous>, transform_indices = @transform_2, window_bounds = array<i64: 1, 100>}, {pipeline_mode = #tpu.pipeline_mode<synchronous>, transform_indices = @transform_3, window_bounds = array<i64: 100, 70>}, {pipeline_mode = #tpu.pipeline_mode<synchronous>, transform_indices = @transform_4, window_bounds = array<i64: 1, 70>}, {pipeline_mode = #tpu.pipeline_mode<synchronous>, transform_indices = @transform_5, window_bounds = array<i64: 70, 40>}, {pipeline_mode = #tpu.pipeline_mode<synchronous>, transform_indices = @transform_6, window_bounds = array<i64: 1, 40>}, {pipeline_mode = #tpu.pipeline_mode<synchronous>, transform_indices = @transform_7, window_bounds = array<i64: 40, 20>}, {pipeline_mode = #tpu.pipeline_mode<synchronous>, transform_indices = @transform_8, window_bounds = array<i64: 1, 20>}, {pipeline_mode = #tpu.pipeline_mode<synchronous>, transform_indices = @transform_9, window_bounds = array<i64: 20, 1>}, {pipeline_mode = #tpu.pipeline_mode<synchronous>, transform_indices = @transform_10, window_bounds = array<i64: 1, 1>}, {transform_indices = @transform_11, window_bounds = array<i64: 1, 1, 256>}]} {
    %c0 = arith.constant 0 : index
    %c0_0 = arith.constant 0 : index
    %0 = vector.load %arg1[%c0, %c0_0] : memref<256x36xf32, #tpu.memory_space<vmem>>, vector<256x36xf32>
    %c0_1 = arith.constant 0 : index
    %c0_2 = arith.constant 0 : index
    %1 = vector.load %arg2[%c0_1, %c0_2] : memref<36x100xf32, #tpu.memory_space<vmem>>, vector<36x100xf32>
    %cst = arith.constant dense<0.000000e+00> : vector<256x100xf32>
    %2 = tpu.matmul %0, %1, %cst {dimension_numbers = #tpu.dot_dimension_numbers<[1], [0], [0], [1], [0, 0, 1, 1], [], []>} : vector<256x36xf32>, vector<36x100xf32>, vector<256x100xf32> -> vector<256x100xf32>
    %c0_3 = arith.constant 0 : index
    %c0_4 = arith.constant 0 : index
    %3 = vector.load %arg3[%c0_3, %c0_4] : memref<1x100xf32, #tpu.memory_space<vmem>>, vector<1x100xf32>
    %4 = vector.broadcast %3 : vector<1x100xf32> to vector<256x100xf32>
    %5 = arith.addf %2, %4 : vector<256x100xf32>
    %cst_5 = arith.constant 0.000000e+00 : f32
    %6 = vector.broadcast %cst_5 : f32 to vector<256x100xf32>
    %7 = arith.maximumf %5, %6 : vector<256x100xf32>
    %c0_6 = arith.constant 0 : index
    %c0_7 = arith.constant 0 : index
    %8 = vector.load %arg4[%c0_6, %c0_7] : memref<100x70xf32, #tpu.memory_space<vmem>>, vector<100x70xf32>
    %cst_8 = arith.constant dense<0.000000e+00> : vector<256x70xf32>
    %9 = tpu.matmul %7, %8, %cst_8 {dimension_numbers = #tpu.dot_dimension_numbers<[1], [0], [0], [1], [0, 0, 1, 1], [], []>} : vector<256x100xf32>, vector<100x70xf32>, vector<256x70xf32> -> vector<256x70xf32>
    %c0_9 = arith.constant 0 : index
    %c0_10 = arith.constant 0 : index
    %10 = vector.load %arg5[%c0_9, %c0_10] : memref<1x70xf32, #tpu.memory_space<vmem>>, vector<1x70xf32>
    %11 = vector.broadcast %10 : vector<1x70xf32> to vector<256x70xf32>
    %12 = arith.addf %9, %11 : vector<256x70xf32>
    %cst_11 = arith.constant 0.000000e+00 : f32
    %13 = vector.broadcast %cst_11 : f32 to vector<256x70xf32>
    %14 = arith.maximumf %12, %13 : vector<256x70xf32>
    %c0_12 = arith.constant 0 : index
    %c0_13 = arith.constant 0 : index
    %15 = vector.load %arg6[%c0_12, %c0_13] : memref<70x40xf32, #tpu.memory_space<vmem>>, vector<70x40xf32>
    %cst_14 = arith.constant dense<0.000000e+00> : vector<256x40xf32>
    %16 = tpu.matmul %14, %15, %cst_14 {dimension_numbers = #tpu.dot_dimension_numbers<[1], [0], [0], [1], [0, 0, 1, 1], [], []>} : vector<256x70xf32>, vector<70x40xf32>, vector<256x40xf32> -> vector<256x40xf32>
    %c0_15 = arith.constant 0 : index
    %c0_16 = arith.constant 0 : index
    %17 = vector.load %arg7[%c0_15, %c0_16] : memref<1x40xf32, #tpu.memory_space<vmem>>, vector<1x40xf32>
    %18 = vector.broadcast %17 : vector<1x40xf32> to vector<256x40xf32>
    %19 = arith.addf %16, %18 : vector<256x40xf32>
    %cst_17 = arith.constant 0.000000e+00 : f32
    %20 = vector.broadcast %cst_17 : f32 to vector<256x40xf32>
    %21 = arith.maximumf %19, %20 : vector<256x40xf32>
    %c0_18 = arith.constant 0 : index
    %c0_19 = arith.constant 0 : index
    %22 = vector.load %arg8[%c0_18, %c0_19] : memref<40x20xf32, #tpu.memory_space<vmem>>, vector<40x20xf32>
    %cst_20 = arith.constant dense<0.000000e+00> : vector<256x20xf32>
    %23 = tpu.matmul %21, %22, %cst_20 {dimension_numbers = #tpu.dot_dimension_numbers<[1], [0], [0], [1], [0, 0, 1, 1], [], []>} : vector<256x40xf32>, vector<40x20xf32>, vector<256x20xf32> -> vector<256x20xf32>
    %c0_21 = arith.constant 0 : index
    %c0_22 = arith.constant 0 : index
    %24 = vector.load %arg9[%c0_21, %c0_22] : memref<1x20xf32, #tpu.memory_space<vmem>>, vector<1x20xf32>
    %25 = vector.broadcast %24 : vector<1x20xf32> to vector<256x20xf32>
    %26 = arith.addf %23, %25 : vector<256x20xf32>
    %cst_23 = arith.constant 0.000000e+00 : f32
    %27 = vector.broadcast %cst_23 : f32 to vector<256x20xf32>
    %28 = arith.maximumf %26, %27 : vector<256x20xf32>
    %c0_24 = arith.constant 0 : index
    %c0_25 = arith.constant 0 : index
    %29 = vector.load %arg10[%c0_24, %c0_25] : memref<20x1xf32, #tpu.memory_space<vmem>>, vector<20x1xf32>
    %30 = vector.shape_cast %29 : vector<20x1xf32> to vector<1x20xf32>
    %31 = vector.broadcast %30 : vector<1x20xf32> to vector<256x20xf32>
    %32 = arith.mulf %28, %31 : vector<256x20xf32>
    %cst_26 = arith.constant dense<0.000000e+00> : vector<256xf32>
    %33 = vector.multi_reduction <add>, %32, %cst_26 [1] : vector<256x20xf32> to vector<256xf32>
    %34 = vector.shape_cast %33 : vector<256xf32> to vector<256x1xf32>
    %c0_27 = arith.constant 0 : index
    %c0_28 = arith.constant 0 : index
    %35 = vector.load %arg11[%c0_27, %c0_28] : memref<1x1xf32, #tpu.memory_space<vmem>>, vector<1x1xf32>
    %36 = vector.broadcast %35 : vector<1x1xf32> to vector<256x1xf32>
    %37 = arith.addf %34, %36 : vector<256x1xf32>
    %38 = vector.shape_cast %37 : vector<256x1xf32> to vector<1x1x256xf32>
    %c0_29 = arith.constant 0 : index
    %c0_30 = arith.constant 0 : index
    %c0_31 = arith.constant 0 : index
    %39 = vector.load %arg12[%c0_29, %c0_30, %c0_31] : memref<1x1x256xf32, #tpu.memory_space<vmem>>, vector<1x1x256xf32>
    tpu.vector_store %arg12[%c0_29, %c0_30, %c0_31], %38 {strides = array<i32>} : memref<1x1x256xf32, #tpu.memory_space<vmem>>, vector<1x1x256xf32>,
    return
  }
  func.func @transform_0(%arg0: i32) -> (i32, i32) {
    %c0_i32 = arith.constant 0 : i32
    %c0_i32_0 = arith.constant 0 : i32
    return %arg0, %c0_i32 : i32, i32
  }
  func.func @transform_1(%arg0: i32) -> (i32, i32) {
    %c0_i32 = arith.constant 0 : i32
    %c0_i32_0 = arith.constant 0 : i32
    %c0_i32_1 = arith.constant 0 : i32
    return %c0_i32, %c0_i32_0 : i32, i32
  }
  func.func @transform_2(%arg0: i32) -> (i32, i32) {
    %c0_i32 = arith.constant 0 : i32
    %c0_i32_0 = arith.constant 0 : i32
    %c0_i32_1 = arith.constant 0 : i32
    return %c0_i32, %c0_i32_0 : i32, i32
  }
  func.func @transform_3(%arg0: i32) -> (i32, i32) {
    %c0_i32 = arith.constant 0 : i32
    %c0_i32_0 = arith.constant 0 : i32
    %c0_i32_1 = arith.constant 0 : i32
    return %c0_i32, %c0_i32_0 : i32, i32
  }
  func.func @transform_4(%arg0: i32) -> (i32, i32) {
    %c0_i32 = arith.constant 0 : i32
    %c0_i32_0 = arith.constant 0 : i32
    %c0_i32_1 = arith.constant 0 : i32
    return %c0_i32, %c0_i32_0 : i32, i32
  }
  func.func @transform_5(%arg0: i32) -> (i32, i32) {
    %c0_i32 = arith.constant 0 : i32
    %c0_i32_0 = arith.constant 0 : i32
    %c0_i32_1 = arith.constant 0 : i32
    return %c0_i32, %c0_i32_0 : i32, i32
  }
  func.func @transform_6(%arg0: i32) -> (i32, i32) {
    %c0_i32 = arith.constant 0 : i32
    %c0_i32_0 = arith.constant 0 : i32
    %c0_i32_1 = arith.constant 0 : i32
    return %c0_i32, %c0_i32_0 : i32, i32
  }
  func.func @transform_7(%arg0: i32) -> (i32, i32) {
    %c0_i32 = arith.constant 0 : i32
    %c0_i32_0 = arith.constant 0 : i32
    %c0_i32_1 = arith.constant 0 : i32
    return %c0_i32, %c0_i32_0 : i32, i32
  }
  func.func @transform_8(%arg0: i32) -> (i32, i32) {
    %c0_i32 = arith.constant 0 : i32
    %c0_i32_0 = arith.constant 0 : i32
    %c0_i32_1 = arith.constant 0 : i32
    return %c0_i32, %c0_i32_0 : i32, i32
  }
  func.func @transform_9(%arg0: i32) -> (i32, i32) {
    %c0_i32 = arith.constant 0 : i32
    %c0_i32_0 = arith.constant 0 : i32
    %c0_i32_1 = arith.constant 0 : i32
    return %c0_i32, %c0_i32_0 : i32, i32
  }
  func.func @transform_10(%arg0: i32) -> (i32, i32) {
    %c0_i32 = arith.constant 0 : i32
    %c0_i32_0 = arith.constant 0 : i32
    %c0_i32_1 = arith.constant 0 : i32
    return %c0_i32, %c0_i32_0 : i32, i32
  }
  func.func @transform_11(%arg0: i32) -> (i32, i32, i32) {
    %c0_i32 = arith.constant 0 : i32
    %c0_i32_0 = arith.constant 0 : i32
    %c0_i32_1 = arith.constant 0 : i32
    return %arg0, %c0_i32, %c0_i32_0 : i32, i32, i32
  }
}

</mosaic_0001>

<bundles_post_ra>
// kernel: tpu_custom_call.1
= control target key start
LH: loop header
LB: loop body
LE: loop exit
PB: predicated region body
PF: predicated region fallthrough
CT: control target
= control target key end

     0   :  { %s8226_s0 = inlined_call_operand.vmem [shape: f32[512,36], index: 0, kind: input, shape index: {}]   ;;  %s8227_s1 = inlined_call_operand.vmem [shape: f32[36,100], index: 1, kind: input, shape index: {}]   ;;  %s8228_s2 = inlined_call_operand.vmem [shape: f32[1,100], index: 2, kind: input, shape index: {}]   ;;  %s8229_s3 = inlined_call_operand.vmem [shape: f32[100,70], index: 3, kind: input, shape index: {}]   ;;  %s8230_s4 = inlined_call_operand.vmem [shape: f32[1,70], index: 4, kind: input, shape index: {}]   ;;  %s8231_s5 = inlined_call_operand.vmem [shape: f32[70,40], index: 5, kind: input, shape index: {}]   ;;  %s8232_s6 = inlined_call_operand.vmem [shape: f32[1,40], index: 6, kind: input, shape index: {}]   ;;  %s8233_s7 = inlined_call_operand.vmem [shape: f32[40,20], index: 7, kind: input, shape index: {}]   ;;  %s8234_s8 = inlined_call_operand.vmem [shape: f32[1,20], index: 8, kind: input, shape index: {}]   ;;  %s8235_s9 = inlined_call_operand.vmem [shape: f32[20,1], index: 9, kind: input, shape index: {}]   ;;  %s8236_s10 = inlined_call_operand.<no memory space> [shape: f32[1,1], index: 10, kind: input, shape index: {}]   ;;  %s8237_s11 = inlined_call_operand.hbm [shape: f32[2,1,256], index: 11, kind: output, shape index: {}]  }
   0x1   :  { %8257 = sst [smem:[#allocation21_spill]] %s8226_s0  ;;  %v16_v0 = vstv %s8236_s10 }
   0x2   :  { %17 = vst [vmem:[#allocation2] sm:$0x1] %v16_v0 }
   0x3   :  { %18 = vsyncpa [#allocation4], 0 }
   0x4   :  { %20 = vsyncpa [#allocation4 + $0x1], 0  ;;  %s6478_s19 = smov 0   ;;  %s6480_s20 = smov 0  }
   0x5   :  { %s6482_s21 = smov 0   ;;  %s6484_s22 = smov 0  }
   0x6 LB: > { %s5666_s10 = sadd.s32 4294967295, %s6410_s22   ;;  %s5667_s23 = sadd.s32 4294967294, %s6410_s22   ;;  %s6410_s22 = sphi %s6484_s22, %s8343_s22   ;;  %s6406_s21 = sphi %s6482_s21, %s8342_s21   ;;  %s6402_s20 = sphi %s6480_s20, %s8341_s20   ;;  %s6398_s19 = sphi %s6478_s19, %s8340_s19  }
   0x7   : > { %s6501_s24 = sadd.s32 1, %s6410_s22   ;;  %s269_s25 = sadd.s32 1, %s6406_s21 }
   0x8   : > { %s266_s26 = ssub.s32 %s6410_s22, %s6501_s24  ;;  %p279_p0 = scmp.ne.s32.totalorder %s6406_s21, %s6402_s20 }
   0x9   : > { %p267_p1 = scmp.eq.s32.totalorder %s266_s26, 0  ;;  %p280_p2 = scmp.eq.s32.totalorder %s5666_s10, 1 }
   0xa   : > { %p285_p3 = scmp.ne.s32.totalorder %s6402_s20, %s6398_s19  ;;  %p286_p4 = scmp.eq.s32.totalorder %s5667_s23, 1 }
   0xb   : > { %s6511_s27 = scalar_select %p267_p1, %s6406_s21, %s269_s25  }
   0xc   : > { %p6513_p5 = por %p280_p2, %p279_p0  ;;  %p6517_p6 = por %p286_p4, %p285_p3 }
   0xd   : > { %p5670_p7 = scmp.ge.s32.totalorder %s6410_s22, 1  ;;  %p343_p8 = scmp.lt.s32.totalorder %s6410_s22, 3 }
   0xf   : > { %p344_p9 = pnand %p5670_p7, %p343_p8 }
  0x11   : > { %347 = sbr.rel (%p344_p9) target bundleno = 1315 (0x523), region = 64 }
  0x16   : > { %v425_v1 = vld [vmem:[%s8227_s1 + $0x20] sm:$0xf]  ;;  %vm530_vm0 = vcmask 1043456   ;;  %v424_v2 = vld [vmem:[%s8227_s1 + $0x18] sm:$0xff]  ;;  %s6529_s15 = sshll.u32 %s5666_s10, 5  ;;  %v423_v4 = vld [vmem:[%s8227_s1 + $0x10] sm:$0xff] }
  0x17   : > { %6040 = vmatprep.subr.msk.mxu0 %vm530_vm0, %v425_v1  ;;  %p384_p10 = scmp.lt.s32.totalorder %s6529_s15, 63  ;;  %v803_v3 = vld [vmem:[%s8229_s3 + $0x60] sm:$0xf]  ;;  %v802_v5 = vld [vmem:[%s8229_s3 + $0x58] sm:$0xff]  ;;  %v801_v6 = vld [vmem:[%s8229_s3 + $0x50] sm:$0xff]  ;;  %vm433_vm1 = vcmask 293888   ;;  %s5606_s13 = scalar_lea.hbm %s8237_s11, %s6529_s15 }
  0x18   : > { %6041 = vmatpush3.msk.msra.mxu0 %vm530_vm0, %v425_v1  ;;  %6098 = vmatprep.subr.msk.mxu1 %vm530_vm0, %v803_v3  ;;  %v422_v7 = vld [vmem:[%s8227_s1 + $0x8] sm:$0xff]  ;;  %v421_v8 = vld [vmem:[%s8227_s1] sm:$0xff]  ;;  %s8260_s0 = sld [smem:[#allocation21_spill]]  ;;  %v798_v14 = vld [vmem:[%s8229_s3 + $0x38] sm:$0xff]  ;;  %vm1281_vm2 = vcmask 1045504   ;;  %vm811_vm3 = vcmask 818176  }
  0x19   : > { %6042 = vmatprep.subr.mxu0 %v424_v2  ;;  %s385_s10 = scalar_select %p384_p10, %s6529_s15, 63  ;;  %6099 = vmatpush3.msk.msra.mxu1 %vm530_vm0, %v803_v3  ;;  %v800_v9 = vld [vmem:[%s8229_s3 + $0x48] sm:$0xff]  ;;  %v799_v12 = vld [vmem:[%s8229_s3 + $0x40] sm:$0xff]  ;;  %v797_v16 = vld [vmem:[%s8229_s3 + $0x30] sm:$0xff]  ;;  %vm1184_vm4 = vcmask 572416   ;;  %vm1554_vm5 = vcmask 326656  }
  0x1a   : > { %6043 = vmatpush3.msra.mxu0 %v424_v2  ;;  %6100 = vmatprep.subr.mxu1 %v802_v5  ;;  %v796_v18 = vld [vmem:[%s8229_s3 + $0x28] sm:$0xff]  ;;  %v795_v20 = vld [vmem:[%s8229_s3 + $0x20] sm:$0xff]  ;;  %v794_v47 = vld [vmem:[%s8229_s3 + $0x18] sm:$0xff]  ;;  %vm1934_vm6 = vcmask 130112   ;;  %vm1941_vm7 = vcmask 195712   ;;  %vm1988_vm8 = vcmask 162816  }
  0x1b   : > { %6044 = vmatprep.subr.mxu0 %v423_v4  ;;  %s5673_s16 = sshll.u32 %s385_s10, 3  ;;  %6101 = vmatpush3.msra.mxu1 %v802_v5  ;;  %v793_v48 = vld [vmem:[%s8229_s3 + $0x10] sm:$0xff]  ;;  %v792_v49 = vld [vmem:[%s8229_s3 + $0x8] sm:$0xff]  ;;  %v791_v50 = vld [vmem:[%s8229_s3] sm:$0xff]  ;;  %vm5407_vm9 = vcmask 261312   ;;  %vm5414_vm10 = vcmask 326912  }
  0x1c   : > { %6045 = vmatpush3.msra.mxu0 %v423_v4  ;;  %6102 = vmatprep.subr.mxu1 %v801_v6  ;;  %v1176_v51 = vld [vmem:[%s8231_s5 + $0x40] sm:$0x3f]  ;;  %v1175_v52 = vld [vmem:[%s8231_s5 + $0x38] sm:$0xff]  ;;  %v1174_v53 = vld [vmem:[%s8231_s5 + $0x30] sm:$0xff]  ;;  %vm5421_vm11 = vcmask 392512   ;;  %vm5428_vm12 = vcmask 458112  }
  0x1d   : > { %6046 = vmatprep.subr.mxu0 %v422_v7  ;;  %6103 = vmatpush3.msra.mxu1 %v801_v6  ;;  %v1173_v54 = vld [vmem:[%s8231_s5 + $0x28] sm:$0xff]  ;;  %v1172_v55 = vld [vmem:[%s8231_s5 + $0x20] sm:$0xff]  ;;  %v1171_v56 = vld [vmem:[%s8231_s5 + $0x18] sm:$0xff]  ;;  %vm5435_vm13 = vcmask 523712   ;;  %vm5442_vm14 = vcmask 589312   ;;  %vm5449_vm15 = vcmask 654912  }
  0x1e   : > { %s6554_s26 = scalar_lea.vmem %s8260_s0, %s5673_s16  ;;  %6047 = vmatpush3.msra.mxu0 %v422_v7  ;;  %6104 = vmatprep.subr.mxu1 %v800_v9  ;;  %v1170_v57 = vld [vmem:[%s8231_s5 + $0x10] sm:$0xff]  ;;  %v1169_v58 = vld [vmem:[%s8231_s5 + $0x8] sm:$0xff]  ;;  %v6677_v59 = vld [vmem:[%s8228_s2] ss:$0 sm:$0xff]  ;;  %vm5456_vm0 = vcmask 720512   ;;  %s6414_s17 = smov [#allocation3]  }
  0x1f   : > { %v389_v10 = vld [vmem:[%s6554_s26] sm:$0xff]  ;;  %v390_v11 = vld [vmem:[%s6554_s26 + $0x8] sm:$0xff]  ;;  %6048 = vmatprep.subr.mxu0 %v421_v8  ;;  %v391_v13 = vld [vmem:[%s6554_s26 + $0x10] sm:$0xff]  ;;  %6105 = vmatpush3.msra.mxu1 %v800_v9  ;;  %s6354_s18 = sshll.u32 %s6414_s17, 4  ;;  %s6355_s18 = int_to_ptr.vmem [resolvable:$false] %s6354_s18 }
  0x20   : > { %6050 = vmatprep.mubr.msk.f32.mxu0 %vm433_vm1, %v389_v10  ;;  %6049 = vmatpush3.msra.mxu0 %v421_v8  ;;  %v392_v15 = vld [vmem:[%s6554_s26 + $0x18] sm:$0xff]  ;;  %v393_v17 = vld [vmem:[%s6554_s26 + $0x20] sm:$0xff]  ;;  %v394_v19 = vld [vmem:[%s6554_s26 + $0x28] sm:$0xff] }
  0x21   : > { %6051 = vmatmul.mubr.msk.f32.vlgmr.msra.gmra.mxu0 %vm433_vm1, %v390_v11  ;;  %6106 = vmatprep.subr.mxu1 %v799_v12  ;;  %v395_v21 = vld [vmem:[%s6554_s26 + $0x30] sm:$0xff]  ;;  %v396_v22 = vld [vmem:[%s6554_s26 + $0x38] sm:$0xff]  ;;  %v397_v23 = vld [vmem:[%s6554_s26 + $0x40] sm:$0xff] }
  0x22   : > { %6053 = vmatprep.mubr.msk.f32.mxu0 %vm433_vm1, %v391_v13  ;;  %6107 = vmatpush3.msra.mxu1 %v799_v12  ;;  %v398_v24 = vld [vmem:[%s6554_s26 + $0x48] sm:$0xff]  ;;  %v399_v25 = vld [vmem:[%s6554_s26 + $0x50] sm:$0xff]  ;;  %v400_v26 = vld [vmem:[%s6554_s26 + $0x58] sm:$0xff] }
  0x23   : > { %6108 = vmatprep.subr.mxu1 %v798_v14  ;;  %v401_v27 = vld [vmem:[%s6554_s26 + $0x60] sm:$0xff]  ;;  %v402_v28 = vld [vmem:[%s6554_s26 + $0x68] sm:$0xff]  ;;  %v403_v29 = vld [vmem:[%s6554_s26 + $0x70] sm:$0xff]  ;;  %6172 = vmatprep.subr.msk.mxu0 %vm1281_vm2, %v1176_v51 }
  0x24   : > { %6109 = vmatpush3.msra.mxu1 %v798_v14  ;;  %v404_v30 = vld [vmem:[%s6554_s26 + $0x78] sm:$0xff]  ;;  %v405_v31 = vld [vmem:[%s6554_s26 + $0x80] sm:$0xff]  ;;  %v406_v32 = vld [vmem:[%s6554_s26 + $0x88] sm:$0xff]  ;;  %6173 = vmatpush3.msk.msra.mxu0 %vm1281_vm2, %v1176_v51  ;;  %vm5470_vm2 = vcmask 851712  }
  0x25   : > { %6054 = vmatmul.mubr.msk.f32.gmra.mxu0 %vm433_vm1, %v392_v15  ;;  %6110 = vmatprep.subr.mxu1 %v797_v16  ;;  %v407_v33 = vld [vmem:[%s6554_s26 + $0x90] sm:$0xff]  ;;  %v408_v34 = vld [vmem:[%s6554_s26 + $0x98] sm:$0xff]  ;;  %v409_v35 = vld [vmem:[%s6554_s26 + $0xa0] sm:$0xff] }
  0x26   : > { %6056 = vmatprep.mubr.msk.f32.mxu0 %vm433_vm1, %v393_v17  ;;  %6111 = vmatpush3.msra.mxu1 %v797_v16  ;;  %v410_v36 = vld [vmem:[%s6554_s26 + $0xa8] sm:$0xff]  ;;  %v411_v37 = vld [vmem:[%s6554_s26 + $0xb0] sm:$0xff]  ;;  %v412_v38 = vld [vmem:[%s6554_s26 + $0xb8] sm:$0xff] }
  0x27   : > { %6112 = vmatprep.subr.mxu1 %v796_v18  ;;  %v413_v39 = vld [vmem:[%s6554_s26 + $0xc0] sm:$0xff]  ;;  %v414_v40 = vld [vmem:[%s6554_s26 + $0xc8] sm:$0xff]  ;;  %v415_v41 = vld [vmem:[%s6554_s26 + $0xd0] sm:$0xff]  ;;  %6174 = vmatprep.subr.mxu0 %v1175_v52 }
  0x28   : > { %6113 = vmatpush3.msra.mxu1 %v796_v18  ;;  %v416_v42 = vld [vmem:[%s6554_s26 + $0xd8] sm:$0xff]  ;;  %v417_v43 = vld [vmem:[%s6554_s26 + $0xe0] sm:$0xff]  ;;  %v418_v44 = vld [vmem:[%s6554_s26 + $0xe8] sm:$0xff]  ;;  %6175 = vmatpush3.msra.mxu0 %v1175_v52 }
  0x29   : > { %6057 = vmatmul.mubr.msk.f32.gmra.mxu0 %vm433_vm1, %v394_v19  ;;  %6114 = vmatprep.subr.mxu1 %v795_v20  ;;  %v419_v45 = vld [vmem:[%s6554_s26 + $0xf0] sm:$0xff]  ;;  %v420_v46 = vld [vmem:[%s6554_s26 + $0xf8] sm:$0xff]  ;;  %s380_s26 = sand.u32 1, %s6402_s20  }
  0x2a   : > { %6059 = vmatprep.mubr.msk.f32.mxu0 %vm433_vm1, %v395_v21  ;;  %6115 = vmatpush3.msra.mxu1 %v795_v20  ;;  %s5671_s23 = sshll.u32 %s380_s26, 1  ;;  %s5594_s14 = scalar_lea.sflag [#allocation4], %s380_s26 }
  0x2b   : > { %6116 = vmatprep.subr.mxu1 %v794_v47  ;;  %6176 = vmatprep.subr.mxu0 %v1174_v53  ;;  %s382_s25 = scalar_lea.vmem [#allocation3], %s5671_s23  ;;  %s6356_s23 = scalar_lea.vmem %s6355_s18, 64 }
  0x2c   : > { %6117 = vmatpush3.msra.mxu1 %v794_v47  ;;  %6177 = vmatpush3.msra.mxu0 %v1174_v53  ;;  %s5608_s30 = sshll.u32 %s382_s25, 4  ;;  %s5609_s30 = int_to_ptr.vmem [resolvable:$true] %s5608_s30 }
  0x2d   : > { %6060 = vmatmul.mubr.msk.f32.gmra.mxu0 %vm433_vm1, %v396_v22  ;;  %6118 = vmatprep.subr.mxu1 %v793_v48  ;;  %s6350_s16 = scalar_lea.vmem %s5609_s30, 32  ;;  %p6357_p0 = scmp.lt.s32.totalorder %s5609_s30, %s6355_s18 }
  0x2e   : > { %6062 = vmatprep.mubr.msk.f32.mxu0 %vm433_vm1, %v397_v23  ;;  %6119 = vmatpush3.msra.mxu1 %v793_v48  ;;  %p6351_p11 = scmp.ne.s32.totalorder %s5609_s30, %s6350_s16  ;;  %p6358_p1 = scmp.lt.s32.totalorder %s6356_s23, %s6350_s16 }
  0x2f   : > { %6120 = vmatprep.subr.mxu1 %v792_v49  ;;  %6178 = vmatprep.subr.mxu0 %v1173_v54 }
  0x30   : > { %6121 = vmatpush3.msra.mxu1 %v792_v49  ;;  %6179 = vmatpush3.msra.mxu0 %v1173_v54  ;;  %p6352_p12 = pnand %p6351_p11, %p6513_p5  ;;  %p6359_p2 = por %p6358_p1, %p6357_p0 }
  0x31   : > { %6063 = vmatmul.mubr.msk.f32.gmra.mxu0 %vm433_vm1, %v398_v24  ;;  %6122 = vmatprep.subr.mxu1 %v791_v50 }
  0x32   : > { %6065 = vmatprep.mubr.msk.f32.mxu0 %vm433_vm1, %v399_v25  ;;  %6123 = vmatpush3.msra.mxu1 %v791_v50  ;;  %p6353_p13 = pneg %p6352_p12 }
  0x33   : > { %6180 = vmatprep.subr.mxu0 %v1172_v55 }
  0x34   : > { %6181 = vmatpush3.msra.mxu0 %v1172_v55  ;;  %p6360_p3 = pnand %p6359_p2, %p6353_p13 }
  0x35   : > { %6066 = vmatmul.mubr.msk.f32.gmra.mxu0 %vm433_vm1, %v400_v26  ;;  %6182 = vmatprep.subr.mxu0 %v1171_v56 }
  0x36   : > { %6068 = vmatprep.mubr.msk.f32.mxu0 %vm433_vm1, %v401_v27  ;;  %6183 = vmatpush3.msra.mxu0 %v1171_v56 }
  0x37   : > { %6184 = vmatprep.subr.mxu0 %v1170_v57 }
  0x38   : > { %6185 = vmatpush3.msra.mxu0 %v1170_v57 }
  0x39   : > { %6069 = vmatmul.mubr.msk.f32.gmra.mxu0 %vm433_vm1, %v402_v28  ;;  %6186 = vmatprep.subr.mxu0 %v1169_v58 }
  0x3a   : > { %6071 = vmatprep.mubr.msk.f32.mxu0 %vm433_vm1, %v403_v29  ;;  %6187 = vmatpush3.msra.mxu0 %v1169_v58 }
  0x3d   : > { %6072 = vmatmul.mubr.msk.f32.gmra.mxu0 %vm433_vm1, %v404_v30 }
  0x3e   : > { %6074 = vmatprep.mubr.msk.f32.mxu0 %vm433_vm1, %v405_v31 }
  0x41   : > { %6075 = vmatmul.mubr.msk.f32.gmra.mxu0 %vm433_vm1, %v406_v32 }
  0x42   : > { %6077 = vmatprep.mubr.msk.f32.mxu0 %vm433_vm1, %v407_v33 }
  0x45   : > { %6078 = vmatmul.mubr.msk.f32.gmra.mxu0 %vm433_vm1, %v408_v34 }
  0x46   : > { %6080 = vmatprep.mubr.msk.f32.mxu0 %vm433_vm1, %v409_v35 }
  0x49   : > { %6081 = vmatmul.mubr.msk.f32.gmra.mxu0 %vm433_vm1, %v410_v36 }
  0x4a   : > { %6083 = vmatprep.mubr.msk.f32.mxu0 %vm433_vm1, %v411_v37 }
  0x4d   : > { %6084 = vmatmul.mubr.msk.f32.gmra.mxu0 %vm433_vm1, %v412_v38 }
  0x4e   : > { %6086 = vmatprep.mubr.msk.f32.mxu0 %vm433_vm1, %v413_v39 }
  0x51   : > { %6087 = vmatmul.mubr.msk.f32.gmra.mxu0 %vm433_vm1, %v414_v40 }
  0x52   : > { %6089 = vmatprep.mubr.msk.f32.mxu0 %vm433_vm1, %v415_v41 }
  0x55   : > { %6090 = vmatmul.mubr.msk.f32.gmra.mxu0 %vm433_vm1, %v416_v42 }
  0x56   : > { %6092 = vmatprep.mubr.msk.f32.mxu0 %vm433_vm1, %v417_v43 }
  0x59   : > { %6093 = vmatmul.mubr.msk.f32.gmra.mxu0 %vm433_vm1, %v418_v44 }
  0x5a   : > { %6095 = vmatprep.mubr.msk.f32.mxu0 %vm433_vm1, %v419_v45 }
  0x5d   : > { %6096 = vmatmul.mubr.msk.f32.gmra.mxu0 %vm433_vm1, %v420_v46  ;;  %vm5463_vm1 = vcmask 786112  }
  0xe1   : > { %v6052_v60 = vpop.f32.mrf.mxu0 }
  0xe2   : > { %v606_v61 = vadd.f32 %v6052_v60, %v6677_v59 }
  0xe3   : > { %v600_v62 = vpop.f32.mrf.mxu0 }
  0xe4   : > { %v601_v63 = vadd.f32 %v6677_v59, %v600_v62  ;;  %v760_v2 = vmax.f32 %v606_v61, 0.0 }
  0xe5   : > { %v6055_v0 = vpop.f32.mrf.mxu0 }
  0xe6   : > { %v759_v1 = vmax.f32 %v601_v63, 0.0  ;;  %v616_v3 = vadd.f32 %v6055_v0, %v6677_v59 }
  0xe7   : > { %v610_v4 = vpop.f32.mrf.mxu0 }
  0xe8   : > { %v611_v5 = vadd.f32 %v6677_v59, %v610_v4  ;;  %6124 = vmatprep.mubr.msk.f32.mxu1 %vm811_vm3, %v759_v1  ;;  %v762_v8 = vmax.f32 %v616_v3, 0.0 }
  0xe9   : > { %v6058_v6 = vpop.f32.mrf.mxu0  ;;  %6125 = vmatmul.mubr.msk.f32.vlgmr.msra.gmra.mxu1 %vm811_vm3, %v760_v2 }
  0xea   : > { %v761_v7 = vmax.f32 %v611_v5, 0.0  ;;  %v626_v9 = vadd.f32 %v6058_v6, %v6677_v59 }
  0xeb   : > { %v620_v10 = vpop.f32.mrf.mxu0 }
  0xec   : > { %v621_v11 = vadd.f32 %v6677_v59, %v620_v10  ;;  %6127 = vmatprep.mubr.msk.f32.mxu1 %vm811_vm3, %v761_v7  ;;  %v764_v14 = vmax.f32 %v626_v9, 0.0 }
  0xed   : > { %v6061_v12 = vpop.f32.mrf.mxu0  ;;  %6128 = vmatmul.mubr.msk.f32.gmra.mxu1 %vm811_vm3, %v762_v8 }
  0xee   : > { %v763_v13 = vmax.f32 %v621_v11, 0.0  ;;  %v636_v15 = vadd.f32 %v6061_v12, %v6677_v59 }
  0xef   : > { %v630_v16 = vpop.f32.mrf.mxu0 }
  0xf0   : > { %v631_v17 = vadd.f32 %v6677_v59, %v630_v16  ;;  %6130 = vmatprep.mubr.msk.f32.mxu1 %vm811_vm3, %v763_v13  ;;  %v766_v20 = vmax.f32 %v636_v15, 0.0 }
  0xf1   : > { %v6064_v18 = vpop.f32.mrf.mxu0  ;;  %6131 = vmatmul.mubr.msk.f32.gmra.mxu1 %vm811_vm3, %v764_v14 }
  0xf2   : > { %v765_v19 = vmax.f32 %v631_v17, 0.0  ;;  %v646_v21 = vadd.f32 %v6064_v18, %v6677_v59 }
  0xf3   : > { %v640_v22 = vpop.f32.mrf.mxu0 }
  0xf4   : > { %v641_v23 = vadd.f32 %v6677_v59, %v640_v22  ;;  %6133 = vmatprep.mubr.msk.f32.mxu1 %vm811_vm3, %v765_v19  ;;  %v768_v26 = vmax.f32 %v646_v21, 0.0 }
  0xf5   : > { %v6067_v24 = vpop.f32.mrf.mxu0  ;;  %6134 = vmatmul.mubr.msk.f32.gmra.mxu1 %vm811_vm3, %v766_v20 }
  0xf6   : > { %v767_v25 = vmax.f32 %v641_v23, 0.0  ;;  %v656_v27 = vadd.f32 %v6067_v24, %v6677_v59 }
  0xf7   : > { %v650_v28 = vpop.f32.mrf.mxu0 }
  0xf8   : > { %v651_v29 = vadd.f32 %v6677_v59, %v650_v28  ;;  %6136 = vmatprep.mubr.msk.f32.mxu1 %vm811_vm3, %v767_v25  ;;  %v770_v32 = vmax.f32 %v656_v27, 0.0 }
  0xf9   : > { %v6070_v30 = vpop.f32.mrf.mxu0  ;;  %6137 = vmatmul.mubr.msk.f32.gmra.mxu1 %vm811_vm3, %v768_v26 }
  0xfa   : > { %v769_v31 = vmax.f32 %v651_v29, 0.0  ;;  %v666_v33 = vadd.f32 %v6070_v30, %v6677_v59  ;;  %v1168_v29 = vld [vmem:[%s8231_s5] sm:$0xff]  ;;  %v1545_v30 = vld [vmem:[%s8233_s7 + $0x18] sm:$0xff] }
  0xfb   : > { %v660_v34 = vpop.f32.mrf.mxu0  ;;  %6188 = vmatprep.subr.mxu0 %v1168_v29 }
  0xfc   : > { %v661_v35 = vadd.f32 %v6677_v59, %v660_v34  ;;  %6139 = vmatprep.mubr.msk.f32.mxu1 %vm811_vm3, %v769_v31  ;;  %v772_v38 = vmax.f32 %v666_v33, 0.0  ;;  %6189 = vmatpush3.msra.mxu0 %v1168_v29  ;;  %v1544_v31 = vld [vmem:[%s8233_s7 + $0x10] sm:$0xff]  ;;  %v1542_v33 = vld [vmem:[%s8233_s7] sm:$0xff] }
  0xfd   : > { %v6073_v36 = vpop.f32.mrf.mxu0  ;;  %6140 = vmatmul.mubr.msk.f32.gmra.mxu1 %vm811_vm3, %v770_v32  ;;  %v1543_v32 = vld [vmem:[%s8233_s7 + $0x8] sm:$0xff]  ;;  %v6764_v34 = vld [vmem:[%s8230_s4] ss:$0 sm:$0xff] }
  0xfe   : > { %v771_v37 = vmax.f32 %v661_v35, 0.0  ;;  %v676_v39 = vadd.f32 %v6073_v36, %v6677_v59 }
  0xff   : > { %v670_v40 = vpop.f32.mrf.mxu0 }
 0x100   : > { %v671_v41 = vadd.f32 %v6677_v59, %v670_v40  ;;  %6142 = vmatprep.mubr.msk.f32.mxu1 %vm811_vm3, %v771_v37  ;;  %v774_v44 = vmax.f32 %v676_v39, 0.0 }
 0x101   : > { %v6076_v42 = vpop.f32.mrf.mxu0  ;;  %6143 = vmatmul.mubr.msk.f32.gmra.mxu1 %vm811_vm3, %v772_v38 }
 0x102   : > { %v773_v43 = vmax.f32 %v671_v41, 0.0  ;;  %v686_v45 = vadd.f32 %v6076_v42, %v6677_v59 }
 0x103   : > { %v680_v46 = vpop.f32.mrf.mxu0 }
 0x104   : > { %v681_v47 = vadd.f32 %v6677_v59, %v680_v46  ;;  %6145 = vmatprep.mubr.msk.f32.mxu1 %vm811_vm3, %v773_v43  ;;  %v776_v50 = vmax.f32 %v686_v45, 0.0 }
 0x105   : > { %v6079_v48 = vpop.f32.mrf.mxu0  ;;  %6146 = vmatmul.mubr.msk.f32.gmra.mxu1 %vm811_vm3, %v774_v44 }
 0x106   : > { %v775_v49 = vmax.f32 %v681_v47, 0.0  ;;  %v696_v51 = vadd.f32 %v6079_v48, %v6677_v59 }
 0x107   : > { %v690_v52 = vpop.f32.mrf.mxu0 }
 0x108   : > { %v691_v53 = vadd.f32 %v6677_v59, %v690_v52  ;;  %6148 = vmatprep.mubr.msk.f32.mxu1 %vm811_vm3, %v775_v49  ;;  %v778_v56 = vmax.f32 %v696_v51, 0.0 }
 0x109   : > { %v6082_v54 = vpop.f32.mrf.mxu0  ;;  %6149 = vmatmul.mubr.msk.f32.gmra.mxu1 %vm811_vm3, %v776_v50 }
 0x10a   : > { %v777_v55 = vmax.f32 %v691_v53, 0.0  ;;  %v706_v57 = vadd.f32 %v6082_v54, %v6677_v59 }
 0x10b   : > { %v700_v58 = vpop.f32.mrf.mxu0 }
 0x10c   : > { %v701_v60 = vadd.f32 %v6677_v59, %v700_v58  ;;  %6151 = vmatprep.mubr.msk.f32.mxu1 %vm811_vm3, %v777_v55  ;;  %v780_v63 = vmax.f32 %v706_v57, 0.0 }
 0x10d   : > { %v6085_v61 = vpop.f32.mrf.mxu0  ;;  %6152 = vmatmul.mubr.msk.f32.gmra.mxu1 %vm811_vm3, %v778_v56 }
 0x10e   : > { %v779_v62 = vmax.f32 %v701_v60, 0.0  ;;  %v716_v0 = vadd.f32 %v6085_v61, %v6677_v59 }
 0x10f   : > { %v710_v1 = vpop.f32.mrf.mxu0 }
 0x110   : > { %v711_v2 = vadd.f32 %v6677_v59, %v710_v1  ;;  %6154 = vmatprep.mubr.msk.f32.mxu1 %vm811_vm3, %v779_v62  ;;  %v782_v5 = vmax.f32 %v716_v0, 0.0 }
 0x111   : > { %v6088_v3 = vpop.f32.mrf.mxu0  ;;  %6155 = vmatmul.mubr.msk.f32.gmra.mxu1 %vm811_vm3, %v780_v63 }
 0x112   : > { %v781_v4 = vmax.f32 %v711_v2, 0.0  ;;  %v726_v6 = vadd.f32 %v6088_v3, %v6677_v59 }
 0x113   : > { %v720_v7 = vpop.f32.mrf.mxu0 }
 0x114   : > { %v721_v8 = vadd.f32 %v6677_v59, %v720_v7  ;;  %6157 = vmatprep.mubr.msk.f32.mxu1 %vm811_vm3, %v781_v4  ;;  %v784_v12 = vmax.f32 %v726_v6, 0.0 }
 0x115   : > { %v6091_v9 = vpop.f32.mrf.mxu0  ;;  %6158 = vmatmul.mubr.msk.f32.gmra.mxu1 %vm811_vm3, %v782_v5 }
 0x116   : > { %v783_v10 = vmax.f32 %v721_v8, 0.0  ;;  %v736_v11 = vadd.f32 %v6091_v9, %v6677_v59 }
 0x117   : > { %v730_v13 = vpop.f32.mrf.mxu0 }
 0x118   : > { %v731_v14 = vadd.f32 %v6677_v59, %v730_v13  ;;  %6160 = vmatprep.mubr.msk.f32.mxu1 %vm811_vm3, %v783_v10  ;;  %v786_v15 = vmax.f32 %v736_v11, 0.0 }
 0x119   : > { %v6094_v16 = vpop.f32.mrf.mxu0  ;;  %6161 = vmatmul.mubr.msk.f32.gmra.mxu1 %vm811_vm3, %v784_v12 }
 0x11a   : > { %v785_v17 = vmax.f32 %v731_v14, 0.0  ;;  %v746_v18 = vadd.f32 %v6094_v16, %v6677_v59 }
 0x11b   : > { %v740_v19 = vpop.f32.mrf.mxu0 }
 0x11c   : > { %v741_v20 = vadd.f32 %v6677_v59, %v740_v19  ;;  %6163 = vmatprep.mubr.msk.f32.mxu1 %vm811_vm3, %v785_v17  ;;  %v788_v21 = vmax.f32 %v746_v18, 0.0 }
 0x11d   : > { %v6097_v22 = vpop.f32.mrf.mxu0  ;;  %6164 = vmatmul.mubr.msk.f32.gmra.mxu1 %vm811_vm3, %v786_v15 }
 0x11e   : > { %v787_v23 = vmax.f32 %v741_v20, 0.0  ;;  %v756_v24 = vadd.f32 %v6097_v22, %v6677_v59 }
 0x11f   : > { %v750_v25 = vpop.f32.mrf.mxu0 }
 0x120   : > { %v751_v26 = vadd.f32 %v6677_v59, %v750_v25  ;;  %6166 = vmatprep.mubr.msk.f32.mxu1 %vm811_vm3, %v787_v23  ;;  %v790_v27 = vmax.f32 %v756_v24, 0.0  ;;  %v1546_v59 = vld [vmem:[%s8233_s7 + $0x20] sm:$0xff] }
 0x121   : > { %6167 = vmatmul.mubr.msk.f32.gmra.mxu1 %vm811_vm3, %v788_v21  ;;  %6238 = vmatprep.subr.mxu0 %v1546_v59 }
 0x122   : > { %v789_v28 = vmax.f32 %v751_v26, 0.0  ;;  %6296 = vmatprep.subr.mxu1 %v1546_v59 }
 0x123   : > { %6301 = vmatpush3.msra.mxu1 %v1546_v59 }
 0x124   : > { %6169 = vmatprep.mubr.msk.f32.mxu1 %vm811_vm3, %v789_v28  ;;  %6297 = vmatprep.subr.mxu1 %v1545_v30 }
 0x125   : > { %6170 = vmatmul.mubr.msk.f32.gmra.mxu1 %vm811_vm3, %v790_v27  ;;  %vm5477_vm3 = vcmask 917312  }
 0x126   : > { %6302 = vmatpush3.msra.mxu1 %v1545_v30 }
 0x127   : > { %6298 = vmatprep.subr.mxu1 %v1544_v31 }
 0x128   : > { %6303 = vmatpush3.msra.mxu1 %v1544_v31 }
 0x129   : > { %6299 = vmatprep.subr.mxu1 %v1543_v32 }
 0x12a   : > { %6304 = vmatpush3.msra.mxu1 %v1543_v32 }
 0x12b   : > { %6300 = vmatprep.subr.mxu1 %v1542_v33 }
 0x12c   : > { %6305 = vmatpush3.msra.mxu1 %v1542_v33 }
 0x1a9   : > { %v6126_v35 = vpop.f32.mrf.mxu1 }
 0x1aa   : > { %v983_v36 = vadd.f32 %v6126_v35, %v6764_v34 }
 0x1ab   : > { %v977_v37 = vpop.f32.mrf.mxu1 }
 0x1ac   : > { %v978_v38 = vadd.f32 %v6764_v34, %v977_v37  ;;  %v1137_v41 = vmax.f32 %v983_v36, 0.0 }
 0x1ad   : > { %v6129_v39 = vpop.f32.mrf.mxu1 }
 0x1ae   : > { %v1136_v40 = vmax.f32 %v978_v38, 0.0  ;;  %v993_v42 = vadd.f32 %v6129_v39, %v6764_v34 }
 0x1af   : > { %v987_v43 = vpop.f32.mrf.mxu1 }
 0x1b0   : > { %v988_v44 = vadd.f32 %v6764_v34, %v987_v43  ;;  %6190 = vmatprep.mubr.msk.f32.mxu0 %vm1184_vm4, %v1136_v40  ;;  %v1139_v47 = vmax.f32 %v993_v42, 0.0 }
 0x1b1   : > { %v6132_v45 = vpop.f32.mrf.mxu1  ;;  %6191 = vmatmul.mubr.msk.f32.vlgmr.msra.gmra.mxu0 %vm1184_vm4, %v1137_v41 }
 0x1b2   : > { %v1138_v46 = vmax.f32 %v988_v44, 0.0  ;;  %6239 = vmatpush3.msra.mxu0 %v1546_v59  ;;  %v1003_v48 = vadd.f32 %v6132_v45, %v6764_v34 }
 0x1b3   : > { %v997_v49 = vpop.f32.mrf.mxu1  ;;  %6240 = vmatprep.subr.mxu0 %v1545_v30 }
 0x1b4   : > { %v998_v50 = vadd.f32 %v6764_v34, %v997_v49  ;;  %6193 = vmatprep.mubr.msk.f32.mxu0 %vm1184_vm4, %v1138_v46  ;;  %6241 = vmatpush3.msra.mxu0 %v1545_v30  ;;  %v1141_v53 = vmax.f32 %v1003_v48, 0.0 }
 0x1b5   : > { %v6135_v51 = vpop.f32.mrf.mxu1  ;;  %6194 = vmatmul.mubr.msk.f32.gmra.mxu0 %vm1184_vm4, %v1139_v47  ;;  %6242 = vmatprep.subr.mxu0 %v1544_v31 }
 0x1b6   : > { %v1140_v52 = vmax.f32 %v998_v50, 0.0  ;;  %6243 = vmatpush3.msra.mxu0 %v1544_v31  ;;  %v1013_v54 = vadd.f32 %v6135_v51, %v6764_v34 }
 0x1b7   : > { %v1007_v55 = vpop.f32.mrf.mxu1  ;;  %6244 = vmatprep.subr.mxu0 %v1543_v32 }
 0x1b8   : > { %v1008_v56 = vadd.f32 %v6764_v34, %v1007_v55  ;;  %6196 = vmatprep.mubr.msk.f32.mxu0 %vm1184_vm4, %v1140_v52  ;;  %6245 = vmatpush3.msra.mxu0 %v1543_v32  ;;  %v1143_v60 = vmax.f32 %v1013_v54, 0.0 }
 0x1b9   : > { %v6138_v57 = vpop.f32.mrf.mxu1  ;;  %6197 = vmatmul.mubr.msk.f32.gmra.mxu0 %vm1184_vm4, %v1141_v53  ;;  %6246 = vmatprep.subr.mxu0 %v1542_v33 }
 0x1ba   : > { %v1142_v58 = vmax.f32 %v1008_v56, 0.0  ;;  %6247 = vmatpush3.msra.mxu0 %v1542_v33  ;;  %v1023_v61 = vadd.f32 %v6138_v57, %v6764_v34 }
 0x1bb   : > { %v1017_v62 = vpop.f32.mrf.mxu1 }
 0x1bc   : > { %v1018_v63 = vadd.f32 %v6764_v34, %v1017_v62  ;;  %6199 = vmatprep.mubr.msk.f32.mxu0 %vm1184_vm4, %v1142_v58  ;;  %v1145_v2 = vmax.f32 %v1023_v61, 0.0 }
 0x1bd   : > { %v6141_v0 = vpop.f32.mrf.mxu1  ;;  %6200 = vmatmul.mubr.msk.f32.gmra.mxu0 %vm1184_vm4, %v1143_v60 }
 0x1be   : > { %v1144_v1 = vmax.f32 %v1018_v63, 0.0  ;;  %v1033_v3 = vadd.f32 %v6141_v0, %v6764_v34 }
 0x1bf   : > { %v1027_v4 = vpop.f32.mrf.mxu1 }
 0x1c0   : > { %v1028_v5 = vadd.f32 %v6764_v34, %v1027_v4  ;;  %6202 = vmatprep.mubr.msk.f32.mxu0 %vm1184_vm4, %v1144_v1  ;;  %v1147_v8 = vmax.f32 %v1033_v3, 0.0 }
 0x1c1   : > { %v6144_v6 = vpop.f32.mrf.mxu1  ;;  %6203 = vmatmul.mubr.msk.f32.gmra.mxu0 %vm1184_vm4, %v1145_v2 }
 0x1c2   : > { %v1146_v7 = vmax.f32 %v1028_v5, 0.0  ;;  %v1043_v9 = vadd.f32 %v6144_v6, %v6764_v34  ;;  %v1908_v5 = vld [vmem:[%s8235_s9] sm:$0xff]  ;;  %v1910_v6 = vld [vmem:[%s8235_s9 + $0x10] sm:$0xf] }
 0x1c3   : > { %v1037_v10 = vpop.f32.mrf.mxu1 }
 0x1c4   : > { %v1038_v11 = vadd.f32 %v6764_v34, %v1037_v10  ;;  %6205 = vmatprep.mubr.msk.f32.mxu0 %vm1184_vm4, %v1146_v7  ;;  %v1149_v14 = vmax.f32 %v1043_v9, 0.0  ;;  %v6412_v7 = vmov 0  }
 0x1c5   : > { %v6147_v12 = vpop.f32.mrf.mxu1  ;;  %6206 = vmatmul.mubr.msk.f32.gmra.mxu0 %vm1184_vm4, %v1147_v8  ;;  %6347 = vset.pattern.permute.xlu0 %v6412_v7  ;;  %v6842_v8 = vld [vmem:[%s8232_s6] ss:$0 sm:$0xff] }
 0x1c6   : > { %v1148_v13 = vmax.f32 %v1038_v11, 0.0  ;;  %v1053_v15 = vadd.f32 %v6147_v12, %v6764_v34  ;;  %6348 = vset.pattern.permute.xlu1 %v6412_v7  ;;  %1915 = vperm.xlu0 %6347, %v1908_v5  }
 0x1c7   : > { %v1047_v16 = vpop.f32.mrf.mxu1  ;;  %1921 = vperm.xlu1 %6348, %v1910_v6  }
 0x1c8   : > { %v1048_v17 = vadd.f32 %v6764_v34, %v1047_v16  ;;  %6208 = vmatprep.mubr.msk.f32.mxu0 %vm1184_vm4, %v1148_v13  ;;  %v1151_v20 = vmax.f32 %v1053_v15, 0.0 }
 0x1c9   : > { %v6150_v18 = vpop.f32.mrf.mxu1  ;;  %6209 = vmatmul.mubr.msk.f32.gmra.mxu0 %vm1184_vm4, %v1149_v14 }
 0x1ca   : > { %v1150_v19 = vmax.f32 %v1048_v17, 0.0  ;;  %v1063_v21 = vadd.f32 %v6150_v18, %v6764_v34 }
 0x1cb   : > { %v1057_v22 = vpop.f32.mrf.mxu1 }
 0x1cc   : > { %v1058_v23 = vadd.f32 %v6764_v34, %v1057_v22  ;;  %6211 = vmatprep.mubr.msk.f32.mxu0 %vm1184_vm4, %v1150_v19  ;;  %v1153_v26 = vmax.f32 %v1063_v21, 0.0 }
 0x1cd   : > { %v6153_v24 = vpop.f32.mrf.mxu1  ;;  %6212 = vmatmul.mubr.msk.f32.gmra.mxu0 %vm1184_vm4, %v1151_v20 }
 0x1ce   : > { %v1152_v25 = vmax.f32 %v1058_v23, 0.0  ;;  %v1073_v27 = vadd.f32 %v6153_v24, %v6764_v34 }
 0x1cf   : > { %v1067_v28 = vpop.f32.mrf.mxu1 }
 0x1d0   : > { %v1068_v29 = vadd.f32 %v6764_v34, %v1067_v28  ;;  %6214 = vmatprep.mubr.msk.f32.mxu0 %vm1184_vm4, %v1152_v25  ;;  %v1155_v31 = vmax.f32 %v1073_v27, 0.0 }
 0x1d1   : > { %v6156_v59 = vpop.f32.mrf.mxu1  ;;  %6215 = vmatmul.mubr.msk.f32.gmra.mxu0 %vm1184_vm4, %v1153_v26 }
 0x1d2   : > { %v1154_v30 = vmax.f32 %v1068_v29, 0.0  ;;  %v1083_v32 = vadd.f32 %v6156_v59, %v6764_v34 }
 0x1d3   : > { %v1077_v33 = vpop.f32.mrf.mxu1 }
 0x1d4   : > { %v1078_v35 = vadd.f32 %v6764_v34, %v1077_v33  ;;  %6217 = vmatprep.mubr.msk.f32.mxu0 %vm1184_vm4, %v1154_v30  ;;  %v1157_v38 = vmax.f32 %v1083_v32, 0.0 }
 0x1d5   : > { %v6159_v36 = vpop.f32.mrf.mxu1  ;;  %6218 = vmatmul.mubr.msk.f32.gmra.mxu0 %vm1184_vm4, %v1155_v31 }
 0x1d6   : > { %v1156_v37 = vmax.f32 %v1078_v35, 0.0  ;;  %v1093_v39 = vadd.f32 %v6159_v36, %v6764_v34 }
 0x1d7   : > { %v1087_v40 = vpop.f32.mrf.mxu1 }
 0x1d8   : > { %v1088_v41 = vadd.f32 %v6764_v34, %v1087_v40  ;;  %6220 = vmatprep.mubr.msk.f32.mxu0 %vm1184_vm4, %v1156_v37  ;;  %v1159_v44 = vmax.f32 %v1093_v39, 0.0 }
 0x1d9   : > { %v6162_v42 = vpop.f32.mrf.mxu1  ;;  %6221 = vmatmul.mubr.msk.f32.gmra.mxu0 %vm1184_vm4, %v1157_v38 }
 0x1da   : > { %v1158_v43 = vmax.f32 %v1088_v41, 0.0  ;;  %v1103_v45 = vadd.f32 %v6162_v42, %v6764_v34 }
 0x1db   : > { %v1097_v46 = vpop.f32.mrf.mxu1 }
 0x1dc   : > { %v1098_v47 = vadd.f32 %v6764_v34, %v1097_v46  ;;  %6223 = vmatprep.mubr.msk.f32.mxu0 %vm1184_vm4, %v1158_v43  ;;  %v1161_v50 = vmax.f32 %v1103_v45, 0.0 }
 0x1dd   : > { %v6165_v48 = vpop.f32.mrf.mxu1  ;;  %6224 = vmatmul.mubr.msk.f32.gmra.mxu0 %vm1184_vm4, %v1159_v44 }
 0x1de   : > { %v1160_v49 = vmax.f32 %v1098_v47, 0.0  ;;  %v1113_v51 = vadd.f32 %v6165_v48, %v6764_v34 }
 0x1df   : > { %v1107_v52 = vpop.f32.mrf.mxu1 }
 0x1e0   : > { %v1108_v53 = vadd.f32 %v6764_v34, %v1107_v52  ;;  %6226 = vmatprep.mubr.msk.f32.mxu0 %vm1184_vm4, %v1160_v49  ;;  %v1163_v57 = vmax.f32 %v1113_v51, 0.0 }
 0x1e1   : > { %v6168_v54 = vpop.f32.mrf.mxu1  ;;  %6227 = vmatmul.mubr.msk.f32.gmra.mxu0 %vm1184_vm4, %v1161_v50 }
 0x1e2   : > { %v1162_v55 = vmax.f32 %v1108_v53, 0.0  ;;  %v1123_v56 = vadd.f32 %v6168_v54, %v6764_v34 }
 0x1e3   : > { %v1117_v58 = vpop.f32.mrf.mxu1 }
 0x1e4   : > { %v1118_v60 = vadd.f32 %v6764_v34, %v1117_v58  ;;  %6229 = vmatprep.mubr.msk.f32.mxu0 %vm1184_vm4, %v1162_v55  ;;  %v1165_v61 = vmax.f32 %v1123_v56, 0.0 }
 0x1e5   : > { %v6171_v62 = vpop.f32.mrf.mxu1  ;;  %6230 = vmatmul.mubr.msk.f32.gmra.mxu0 %vm1184_vm4, %v1163_v57 }
 0x1e6   : > { %v1164_v63 = vmax.f32 %v1118_v60, 0.0  ;;  %v1133_v0 = vadd.f32 %v6171_v62, %v6764_v34 }
 0x1e7   : > { %v1127_v1 = vpop.f32.mrf.mxu1 }
 0x1e8   : > { %v1128_v2 = vadd.f32 %v6764_v34, %v1127_v1  ;;  %6232 = vmatprep.mubr.msk.f32.mxu0 %vm1184_vm4, %v1164_v63  ;;  %v1167_v3 = vmax.f32 %v1133_v0, 0.0  ;;  %v1909_v34 = vld [vmem:[%s8235_s9 + $0x8] sm:$0xff] }
 0x1e9   : > { %6233 = vmatmul.mubr.msk.f32.gmra.mxu0 %vm1184_vm4, %v1165_v61  ;;  %1918 = vperm.xlu0 %6347, %v1909_v34  }
 0x1ea   : > { %v1166_v4 = vmax.f32 %v1128_v2, 0.0 }
 0x1ec   : > { %6235 = vmatprep.mubr.msk.f32.mxu0 %vm1184_vm4, %v1166_v4 }
 0x1ed   : > { %6236 = vmatmul.mubr.msk.f32.gmra.mxu0 %vm1184_vm4, %v1167_v3  ;;  %vm5484_vm4 = vcmask 982912  }
 0x271   : > { %v6192_v9 = vpop.f32.mrf.mxu0 }
 0x272   : > { %v1357_v10 = vadd.f32 %v6192_v9, %v6842_v8 }
 0x273   : > { %v1351_v11 = vpop.f32.mrf.mxu0 }
 0x274   : > { %v1352_v12 = vadd.f32 %v6842_v8, %v1351_v11  ;;  %v1511_v15 = vmax.f32 %v1357_v10, 0.0 }
 0x275   : > { %v6195_v13 = vpop.f32.mrf.mxu0 }
 0x276   : > { %v1510_v14 = vmax.f32 %v1352_v12, 0.0  ;;  %v1367_v16 = vadd.f32 %v6195_v13, %v6842_v8 }
 0x277   : > { %v1361_v17 = vpop.f32.mrf.mxu0 }
 0x278   : > { %v1362_v18 = vadd.f32 %v6842_v8, %v1361_v17  ;;  %6248 = vmatprep.mubr.msk.f32.mxu0 %vm1554_vm5, %v1510_v14  ;;  %v1513_v21 = vmax.f32 %v1367_v16, 0.0 }
 0x279   : > { %v6198_v19 = vpop.f32.mrf.mxu0  ;;  %6249 = vmatmul.mubr.msk.f32.vlgmr.msra.gmra.mxu0 %vm1554_vm5, %v1511_v15 }
 0x27a   : > { %v1512_v20 = vmax.f32 %v1362_v18, 0.0  ;;  %v1377_v22 = vadd.f32 %v6198_v19, %v6842_v8 }
 0x27b   : > { %v1371_v23 = vpop.f32.mrf.mxu0 }
 0x27c   : > { %v1372_v24 = vadd.f32 %v6842_v8, %v1371_v23  ;;  %6251 = vmatprep.mubr.msk.f32.mxu0 %vm1554_vm5, %v1512_v20  ;;  %v1515_v27 = vmax.f32 %v1377_v22, 0.0 }
 0x27d   : > { %v6201_v25 = vpop.f32.mrf.mxu0  ;;  %6252 = vmatmul.mubr.msk.f32.gmra.mxu0 %vm1554_vm5, %v1513_v21 }
 0x27e   : > { %v1514_v26 = vmax.f32 %v1372_v24, 0.0  ;;  %v1387_v28 = vadd.f32 %v6201_v25, %v6842_v8 }
 0x27f   : > { %v1381_v29 = vpop.f32.mrf.mxu0 }
 0x280   : > { %v1382_v59 = vadd.f32 %v6842_v8, %v1381_v29  ;;  %6254 = vmatprep.mubr.msk.f32.mxu1 %vm1554_vm5, %v1514_v26  ;;  %v1517_v32 = vmax.f32 %v1387_v28, 0.0 }
 0x281   : > { %v6204_v30 = vpop.f32.mrf.mxu0  ;;  %6255 = vmatmul.mubr.msk.f32.vlgmr.msra.gmra.mxu1 %vm1554_vm5, %v1515_v27 }
 0x282   : > { %v1516_v31 = vmax.f32 %v1382_v59, 0.0  ;;  %v1397_v33 = vadd.f32 %v6204_v30, %v6842_v8 }
 0x283   : > { %v1391_v35 = vpop.f32.mrf.mxu0 }
 0x284   : > { %v1392_v36 = vadd.f32 %v6842_v8, %v1391_v35  ;;  %6257 = vmatprep.mubr.msk.f32.mxu1 %vm1554_vm5, %v1516_v31  ;;  %v1519_v39 = vmax.f32 %v1397_v33, 0.0 }
 0x285   : > { %v6207_v37 = vpop.f32.mrf.mxu0  ;;  %6258 = vmatmul.mubr.msk.f32.gmra.mxu1 %vm1554_vm5, %v1517_v32 }
 0x286   : > { %v1518_v38 = vmax.f32 %v1392_v36, 0.0  ;;  %v1407_v40 = vadd.f32 %v6207_v37, %v6842_v8 }
 0x287   : > { %v1401_v41 = vpop.f32.mrf.mxu0 }
 0x288   : > { %v1402_v42 = vadd.f32 %v6842_v8, %v1401_v41  ;;  %6260 = vmatprep.mubr.msk.f32.mxu1 %vm1554_vm5, %v1518_v38  ;;  %v1521_v45 = vmax.f32 %v1407_v40, 0.0 }
 0x289   : > { %v6210_v43 = vpop.f32.mrf.mxu0  ;;  %6261 = vmatmul.mubr.msk.f32.gmra.mxu1 %vm1554_vm5, %v1519_v39 }
 0x28a   : > { %v1520_v44 = vmax.f32 %v1402_v42, 0.0  ;;  %v1417_v46 = vadd.f32 %v6210_v43, %v6842_v8  ;;  %v8238_v42 = vlaneseq }
 0x28b   : > { %v1411_v47 = vpop.f32.mrf.mxu0 }
 0x28c   : > { %v1412_v48 = vadd.f32 %v6842_v8, %v1411_v47  ;;  %6263 = vmatprep.mubr.msk.f32.mxu1 %vm1554_vm5, %v1520_v44  ;;  %v1523_v51 = vmax.f32 %v1417_v46, 0.0  ;;  %v6909_v43 = vand.u32 127, %v8238_v42  ;;  %v1916_v44 = vpop.permute.xlu0 %1915 }
 0x28d   : > { %v6213_v49 = vpop.f32.mrf.mxu0  ;;  %6264 = vmatmul.mubr.msk.f32.gmra.mxu1 %vm1554_vm5, %v1521_v45  ;;  %v6912_v45 = vshrl.u32 %v8238_v42, 7 }
 0x28e   : > { %v1522_v50 = vmax.f32 %v1412_v48, 0.0  ;;  %v1427_v52 = vadd.f32 %v6213_v49, %v6842_v8  ;;  %8261 = vst [vmem:[#allocation6_spill] sm:$0xff] %v6909_v43  ;;  %v1936_v46 = vadd.s32 4294967280, %v6909_v43 }
 0x28f   : > { %v1421_v53 = vpop.f32.mrf.mxu0  ;;  %8262 = vst [vmem:[#allocation7_spill] sm:$0xff] %v6912_v45  ;;  %v6918_v47 = vsub.s32 %v6909_v43, %v6912_v45 }
 0x290   : > { %v1422_v54 = vadd.f32 %v6842_v8, %v1421_v53  ;;  %6266 = vmatprep.mubr.msk.f32.mxu1 %vm1554_vm5, %v1522_v50  ;;  %v1525_v57 = vmax.f32 %v1427_v52, 0.0  ;;  %v1919_v49 = vpop.permute.xlu0 %1918  ;;  %v6924_v50 = vsub.s32 %v1936_v46, %v6912_v45  ;;  %v1922_v53 = vpop.permute.xlu1 %1921 }
 0x291   : > { %v6216_v55 = vpop.f32.mrf.mxu0  ;;  %6267 = vmatmul.mubr.msk.f32.gmra.mxu1 %vm1554_vm5, %v1523_v51  ;;  %8263 = vst [vmem:[#allocation8_spill] sm:$0xff] %v6918_v47  ;;  %v1928_v51 = vrot.slane %v1916_v44, %v6918_v47 }
 0x292   : > { %v1524_v56 = vmax.f32 %v1422_v54, 0.0  ;;  %v1437_v58 = vadd.f32 %v6216_v55, %v6842_v8  ;;  %8265 = vst [vmem:[#allocation10_spill] sm:$0xff] %v6924_v50  ;;  %v6931_v54 = vld [vmem:[%s8234_s8] ss:$0 sm:$0xff]  ;;  %v1940_v55 = vrot.slane %v1922_v53, %v6924_v50 }
 0x293   : > { %v1431_v60 = vpop.f32.mrf.mxu0 }
 0x294   : > { %v1432_v61 = vadd.f32 %v6842_v8, %v1431_v60  ;;  %6269 = vmatprep.mubr.msk.f32.mxu1 %vm1554_vm5, %v1524_v56  ;;  %v1527_v0 = vmax.f32 %v1437_v58, 0.0 }
 0x295   : > { %v6219_v62 = vpop.f32.mrf.mxu0  ;;  %6270 = vmatmul.mubr.msk.f32.gmra.mxu1 %vm1554_vm5, %v1525_v57 }
 0x296   : > { %v1526_v63 = vmax.f32 %v1432_v61, 0.0  ;;  %v1447_v1 = vadd.f32 %v6219_v62, %v6842_v8 }
 0x297   : > { %v1441_v2 = vpop.f32.mrf.mxu0 }
 0x298   : > { %v1442_v3 = vadd.f32 %v6842_v8, %v1441_v2  ;;  %6272 = vmatprep.mubr.msk.f32.mxu1 %vm1554_vm5, %v1526_v63  ;;  %v1529_v6 = vmax.f32 %v1447_v1, 0.0 }
 0x299   : > { %v6222_v4 = vpop.f32.mrf.mxu0  ;;  %6273 = vmatmul.mubr.msk.f32.gmra.mxu1 %vm1554_vm5, %v1527_v0 }
 0x29a   : > { %v1528_v5 = vmax.f32 %v1442_v3, 0.0  ;;  %v1457_v7 = vadd.f32 %v6222_v4, %v6842_v8 }
 0x29b   : > { %v1451_v34 = vpop.f32.mrf.mxu0 }
 0x29c   : > { %v1452_v9 = vadd.f32 %v6842_v8, %v1451_v34  ;;  %6275 = vmatprep.mubr.msk.f32.mxu1 %vm1554_vm5, %v1528_v5  ;;  %v1531_v12 = vmax.f32 %v1457_v7, 0.0 }
 0x29d   : > { %v6225_v10 = vpop.f32.mrf.mxu0  ;;  %6276 = vmatmul.mubr.msk.f32.gmra.mxu1 %vm1554_vm5, %v1529_v6 }
 0x29e   : > { %v1530_v11 = vmax.f32 %v1452_v9, 0.0  ;;  %v1467_v13 = vadd.f32 %v6225_v10, %v6842_v8 }
 0x29f   : > { %v1461_v14 = vpop.f32.mrf.mxu0 }
 0x2a0   : > { %v1462_v15 = vadd.f32 %v6842_v8, %v1461_v14  ;;  %6278 = vmatprep.mubr.msk.f32.mxu1 %vm1554_vm5, %v1530_v11  ;;  %v1533_v18 = vmax.f32 %v1467_v13, 0.0 }
 0x2a1   : > { %v6228_v16 = vpop.f32.mrf.mxu0  ;;  %6279 = vmatmul.mubr.msk.f32.gmra.mxu1 %vm1554_vm5, %v1531_v12 }
 0x2a2   : > { %v1532_v17 = vmax.f32 %v1462_v15, 0.0  ;;  %v1477_v19 = vadd.f32 %v6228_v16, %v6842_v8 }
 0x2a3   : > { %v1471_v20 = vpop.f32.mrf.mxu0 }
 0x2a4   : > { %v1472_v21 = vadd.f32 %v6842_v8, %v1471_v20  ;;  %6281 = vmatprep.mubr.msk.f32.mxu1 %vm1554_vm5, %v1532_v17  ;;  %v1535_v24 = vmax.f32 %v1477_v19, 0.0 }
 0x2a5   : > { %v6231_v22 = vpop.f32.mrf.mxu0  ;;  %6282 = vmatmul.mubr.msk.f32.gmra.mxu1 %vm1554_vm5, %v1533_v18 }
 0x2a6   : > { %v1534_v23 = vmax.f32 %v1472_v21, 0.0  ;;  %v1487_v25 = vadd.f32 %v6231_v22, %v6842_v8 }
 0x2a7   : > { %v1481_v26 = vpop.f32.mrf.mxu0 }
 0x2a8   : > { %v1482_v27 = vadd.f32 %v6842_v8, %v1481_v26  ;;  %6284 = vmatprep.mubr.msk.f32.mxu1 %vm1554_vm5, %v1534_v23  ;;  %v1537_v59 = vmax.f32 %v1487_v25, 0.0 }
 0x2a9   : > { %v6234_v28 = vpop.f32.mrf.mxu0  ;;  %6285 = vmatmul.mubr.msk.f32.gmra.mxu1 %vm1554_vm5, %v1535_v24 }
 0x2aa   : > { %v1536_v29 = vmax.f32 %v1482_v27, 0.0  ;;  %v1497_v30 = vadd.f32 %v6234_v28, %v6842_v8 }
 0x2ab   : > { %v1491_v31 = vpop.f32.mrf.mxu0 }
 0x2ac   : > { %v1492_v32 = vadd.f32 %v6842_v8, %v1491_v31  ;;  %6287 = vmatprep.mubr.msk.f32.mxu1 %vm1554_vm5, %v1536_v29  ;;  %v1539_v37 = vmax.f32 %v1497_v30, 0.0 }
 0x2ad   : > { %v6237_v33 = vpop.f32.mrf.mxu0  ;;  %6288 = vmatmul.mubr.msk.f32.gmra.mxu1 %vm1554_vm5, %v1537_v59 }
 0x2ae   : > { %v1538_v35 = vmax.f32 %v1492_v32, 0.0  ;;  %v1507_v36 = vadd.f32 %v6237_v33, %v6842_v8 }
 0x2af   : > { %v1501_v38 = vpop.f32.mrf.mxu0 }
 0x2b0   : > { %v1502_v39 = vadd.f32 %v6842_v8, %v1501_v38  ;;  %6290 = vmatprep.mubr.msk.f32.mxu1 %vm1554_vm5, %v1538_v35  ;;  %v1541_v40 = vmax.f32 %v1507_v36, 0.0  ;;  %v1929_v8 = vadd.s32 4294967288, %v6909_v43 }
 0x2b1   : > { %6291 = vmatmul.mubr.msk.f32.gmra.mxu1 %vm1554_vm5, %v1539_v37 }
 0x2b2   : > { %v1540_v41 = vmax.f32 %v1502_v39, 0.0  ;;  %v6921_v48 = vsub.s32 %v1929_v8, %v6912_v45 }
 0x2b4   : > { %6293 = vmatprep.mubr.msk.f32.mxu1 %vm1554_vm5, %v1540_v41  ;;  %8264 = vst [vmem:[#allocation9_spill] sm:$0xff] %v6921_v48  ;;  %v1933_v52 = vrot.slane %v1919_v49, %v6921_v48 }
 0x2b5   : > { %6294 = vmatmul.mubr.msk.f32.gmra.mxu1 %vm1554_vm5, %v1541_v40  ;;  %vm5491_vm5 = vcmask 1048512  }
 0x2b6   : > { %v1935_v57 = vsel %vm1934_vm6, %v1933_v52, %v1928_v51 }
 0x2b7   : > { %v6938_v63 = vsel %vm1941_vm7, %v1940_v55, %v1935_v57 }
 0x339   : > { %v6250_v56 = vpop.f32.mrf.mxu0 }
 0x33a   : > { %v1723_v58 = vadd.f32 %v6250_v56, %v6931_v54 }
 0x33b   : > { %v1717_v60 = vpop.f32.mrf.mxu0 }
 0x33c   : > { %v1877_v61 = vmax.f32 %v1723_v58, 0.0  ;;  %v1718_v62 = vadd.f32 %v6931_v54, %v1717_v60 }
 0x33d   : > { %v6253_v0 = vpop.f32.mrf.mxu0 }
 0x33e   : > { %v1876_v1 = vmax.f32 %v1718_v62, 0.0  ;;  %v1733_v2 = vadd.f32 %v6253_v0, %v6931_v54  ;;  %v1957_v3 = vmul.f32 %v6938_v63, %v1877_v61 }
 0x33f   : > { %v1727_v4 = vpop.f32.mrf.mxu0 }
 0x340   : > { %v1879_v5 = vmax.f32 %v1733_v2, 0.0  ;;  %v1728_v6 = vadd.f32 %v6931_v54, %v1727_v4  ;;  %v1992_v7 = vsel %vm1988_vm8, %v1957_v3, 0.0  ;;  %v1956_v34 = vmul.f32 %v6938_v63, %v1876_v1 }
 0x341   : > { %v6256_v9 = vpop.f32.mrf.mxu1  ;;  %1993 = vadd.xlane.f32.xlu0 %v1992_v7 }
 0x342   : > { %v1878_v10 = vmax.f32 %v1728_v6, 0.0  ;;  %v1743_v11 = vadd.f32 %v6256_v9, %v6931_v54  ;;  %v1989_v12 = vsel %vm1988_vm8, %v1956_v34, 0.0  ;;  %v1959_v13 = vmul.f32 %v6938_v63, %v1879_v5 }
 0x343   : > { %v1737_v14 = vpop.f32.mrf.mxu1  ;;  %1990 = vadd.xlane.f32.xlu1 %v1989_v12 }
 0x344   : > { %v1881_v15 = vmax.f32 %v1743_v11, 0.0  ;;  %v1738_v16 = vadd.f32 %v6931_v54, %v1737_v14  ;;  %v1958_v17 = vmul.f32 %v6938_v63, %v1878_v10  ;;  %v1998_v19 = vsel %vm1988_vm8, %v1959_v13, 0.0 }
 0x345   : > { %v6259_v18 = vpop.f32.mrf.mxu1 }
 0x346   : > { %v1880_v20 = vmax.f32 %v1738_v16, 0.0  ;;  %v1753_v21 = vadd.f32 %v6259_v18, %v6931_v54  ;;  %v1995_v22 = vsel %vm1988_vm8, %v1958_v17, 0.0  ;;  %v1961_v23 = vmul.f32 %v6938_v63, %v1881_v15 }
 0x347   : > { %v1747_v24 = vpop.f32.mrf.mxu1  ;;  %1996 = vadd.xlane.f32.xlu0 %v1995_v22  ;;  %1999 = vadd.xlane.f32.xlu1 %v1998_v19 }
 0x348   : > { %v1883_v25 = vmax.f32 %v1753_v21, 0.0  ;;  %v1748_v26 = vadd.f32 %v6931_v54, %v1747_v24  ;;  %v1960_v27 = vmul.f32 %v6938_v63, %v1880_v20  ;;  %v2004_v29 = vsel %vm1988_vm8, %v1961_v23, 0.0 }
 0x349   : > { %v6262_v28 = vpop.f32.mrf.mxu1 }
 0x34a   : > { %v1882_v59 = vmax.f32 %v1748_v26, 0.0  ;;  %v1763_v30 = vadd.f32 %v6262_v28, %v6931_v54  ;;  %v2001_v31 = vsel %vm1988_vm8, %v1960_v27, 0.0  ;;  %v1963_v32 = vmul.f32 %v6938_v63, %v1883_v25 }
 0x34b   : > { %v1757_v33 = vpop.f32.mrf.mxu1  ;;  %2002 = vadd.xlane.f32.xlu0 %v2001_v31  ;;  %2005 = vadd.xlane.f32.xlu1 %v2004_v29 }
 0x34c   : > { %v1885_v35 = vmax.f32 %v1763_v30, 0.0  ;;  %v1758_v36 = vadd.f32 %v6931_v54, %v1757_v33  ;;  %v1962_v37 = vmul.f32 %v6938_v63, %v1882_v59  ;;  %v2010_v39 = vsel %vm1988_vm8, %v1963_v32, 0.0 }
 0x34d   : > { %v6265_v38 = vpop.f32.mrf.mxu1 }
 0x34e   : > { %v1884_v40 = vmax.f32 %v1758_v36, 0.0  ;;  %v1773_v41 = vadd.f32 %v6265_v38, %v6931_v54  ;;  %v2007_v44 = vsel %vm1988_vm8, %v1962_v37, 0.0  ;;  %v1965_v8 = vmul.f32 %v6938_v63, %v1885_v35 }
 0x34f   : > { %v1767_v46 = vpop.f32.mrf.mxu1  ;;  %2008 = vadd.xlane.f32.xlu0 %v2007_v44  ;;  %2011 = vadd.xlane.f32.xlu1 %v2010_v39 }
 0x350   : > { %v1887_v49 = vmax.f32 %v1773_v41, 0.0  ;;  %v1768_v51 = vadd.f32 %v6931_v54, %v1767_v46  ;;  %v1964_v52 = vmul.f32 %v6938_v63, %v1884_v40  ;;  %v2016_v55 = vsel %vm1988_vm8, %v1965_v8, 0.0 }
 0x351   : > { %v6268_v53 = vpop.f32.mrf.mxu1 }
 0x352   : > { %v1886_v56 = vmax.f32 %v1768_v51, 0.0  ;;  %v1783_v57 = vadd.f32 %v6268_v53, %v6931_v54  ;;  %v2013_v58 = vsel %vm1988_vm8, %v1964_v52, 0.0  ;;  %v1967_v60 = vmul.f32 %v6938_v63, %v1887_v49 }
 0x353   : > { %v1777_v61 = vpop.f32.mrf.mxu1  ;;  %2014 = vadd.xlane.f32.xlu0 %v2013_v58  ;;  %2017 = vadd.xlane.f32.xlu1 %v2016_v55 }
 0x354   : > { %v1889_v62 = vmax.f32 %v1783_v57, 0.0  ;;  %v1778_v0 = vadd.f32 %v6931_v54, %v1777_v61  ;;  %v1966_v1 = vmul.f32 %v6938_v63, %v1886_v56  ;;  %v2022_v3 = vsel %vm1988_vm8, %v1967_v60, 0.0 }
 0x355   : > { %v6271_v2 = vpop.f32.mrf.mxu1 }
 0x356   : > { %v1888_v4 = vmax.f32 %v1778_v0, 0.0  ;;  %v1793_v5 = vadd.f32 %v6271_v2, %v6931_v54  ;;  %v2019_v6 = vsel %vm1988_vm8, %v1966_v1, 0.0  ;;  %v1969_v7 = vmul.f32 %v6938_v63, %v1889_v62 }
 0x357   : > { %v1787_v34 = vpop.f32.mrf.mxu1  ;;  %2020 = vadd.xlane.f32.xlu0 %v2019_v6  ;;  %2023 = vadd.xlane.f32.xlu1 %v2022_v3 }
 0x358   : > { %v1891_v9 = vmax.f32 %v1793_v5, 0.0  ;;  %v1788_v10 = vadd.f32 %v6931_v54, %v1787_v34  ;;  %v1968_v11 = vmul.f32 %v6938_v63, %v1888_v4  ;;  %v2028_v13 = vsel %vm1988_vm8, %v1969_v7, 0.0 }
 0x359   : > { %v6274_v12 = vpop.f32.mrf.mxu1 }
 0x35a   : > { %v1890_v14 = vmax.f32 %v1788_v10, 0.0  ;;  %v1803_v15 = vadd.f32 %v6274_v12, %v6931_v54  ;;  %v2025_v16 = vsel %vm1988_vm8, %v1968_v11, 0.0  ;;  %v1971_v17 = vmul.f32 %v6938_v63, %v1891_v9 }
 0x35b   : > { %v1797_v18 = vpop.f32.mrf.mxu1  ;;  %2026 = vadd.xlane.f32.xlu0 %v2025_v16  ;;  %2029 = vadd.xlane.f32.xlu1 %v2028_v13 }
 0x35c   : > { %v1893_v19 = vmax.f32 %v1803_v15, 0.0  ;;  %v1798_v20 = vadd.f32 %v6931_v54, %v1797_v18  ;;  %v1970_v21 = vmul.f32 %v6938_v63, %v1890_v14  ;;  %v2034_v23 = vsel %vm1988_vm8, %v1971_v17, 0.0 }
 0x35d   : > { %v6277_v22 = vpop.f32.mrf.mxu1 }
 0x35e   : > { %v1892_v24 = vmax.f32 %v1798_v20, 0.0  ;;  %v1813_v25 = vadd.f32 %v6277_v22, %v6931_v54  ;;  %v2031_v26 = vsel %vm1988_vm8, %v1970_v21, 0.0  ;;  %v1973_v27 = vmul.f32 %v6938_v63, %v1893_v19 }
 0x35f   : > { %v1807_v28 = vpop.f32.mrf.mxu1  ;;  %2032 = vadd.xlane.f32.xlu0 %v2031_v26  ;;  %2035 = vadd.xlane.f32.xlu1 %v2034_v23 }
 0x360   : > { %v1895_v29 = vmax.f32 %v1813_v25, 0.0  ;;  %v1808_v59 = vadd.f32 %v6931_v54, %v1807_v28  ;;  %v1972_v30 = vmul.f32 %v6938_v63, %v1892_v24  ;;  %v2040_v32 = vsel %vm1988_vm8, %v1973_v27, 0.0 }
 0x361   : > { %v6280_v31 = vpop.f32.mrf.mxu1 }
 0x362   : > { %v1894_v33 = vmax.f32 %v1808_v59, 0.0  ;;  %v1823_v35 = vadd.f32 %v6280_v31, %v6931_v54  ;;  %v2037_v36 = vsel %vm1988_vm8, %v1972_v30, 0.0  ;;  %v1975_v37 = vmul.f32 %v6938_v63, %v1895_v29 }
 0x363   : > { %v1817_v38 = vpop.f32.mrf.mxu1  ;;  %2038 = vadd.xlane.f32.xlu0 %v2037_v36  ;;  %2041 = vadd.xlane.f32.xlu1 %v2040_v32 }
 0x364   : > { %v1897_v39 = vmax.f32 %v1823_v35, 0.0  ;;  %v1818_v40 = vadd.f32 %v6931_v54, %v1817_v38  ;;  %v1974_v41 = vmul.f32 %v6938_v63, %v1894_v33  ;;  %v2046_v8 = vsel %vm1988_vm8, %v1975_v37, 0.0 }
 0x365   : > { %v6283_v44 = vpop.f32.mrf.mxu1 }
 0x366   : > { %v1896_v46 = vmax.f32 %v1818_v40, 0.0  ;;  %v1833_v49 = vadd.f32 %v6283_v44, %v6931_v54  ;;  %v2043_v51 = vsel %vm1988_vm8, %v1974_v41, 0.0  ;;  %v1977_v52 = vmul.f32 %v6938_v63, %v1897_v39 }
 0x367   : > { %v1827_v53 = vpop.f32.mrf.mxu1  ;;  %2044 = vadd.xlane.f32.xlu0 %v2043_v51  ;;  %2047 = vadd.xlane.f32.xlu1 %v2046_v8 }
 0x368   : > { %v1899_v55 = vmax.f32 %v1833_v49, 0.0  ;;  %v1828_v56 = vadd.f32 %v6931_v54, %v1827_v53  ;;  %v1976_v57 = vmul.f32 %v6938_v63, %v1896_v46  ;;  %v2052_v60 = vsel %vm1988_vm8, %v1977_v52, 0.0  ;;  %v7034_v49 = vld [vmem:[#allocation2] ss:$0 sm:$0xff] }
 0x369   : > { %v6286_v58 = vpop.f32.mrf.mxu1 }
 0x36a   : > { %v1898_v61 = vmax.f32 %v1828_v56, 0.0  ;;  %v1843_v62 = vadd.f32 %v6286_v58, %v6931_v54  ;;  %v2049_v0 = vsel %vm1988_vm8, %v1976_v57, 0.0  ;;  %v1979_v1 = vmul.f32 %v6938_v63, %v1899_v55 }
 0x36b   : > { %v1837_v2 = vpop.f32.mrf.mxu1  ;;  %2050 = vadd.xlane.f32.xlu0 %v2049_v0  ;;  %2053 = vadd.xlane.f32.xlu1 %v2052_v60 }
 0x36c   : > { %v1901_v3 = vmax.f32 %v1843_v62, 0.0  ;;  %v1838_v4 = vadd.f32 %v6931_v54, %v1837_v2  ;;  %v1978_v5 = vmul.f32 %v6938_v63, %v1898_v61  ;;  %v2058_v7 = vsel %vm1988_vm8, %v1979_v1, 0.0 }
 0x36d   : > { %v6289_v6 = vpop.f32.mrf.mxu1 }
 0x36e   : > { %v1900_v34 = vmax.f32 %v1838_v4, 0.0  ;;  %v1853_v9 = vadd.f32 %v6289_v6, %v6931_v54  ;;  %v2055_v10 = vsel %vm1988_vm8, %v1978_v5, 0.0  ;;  %v1981_v11 = vmul.f32 %v6938_v63, %v1901_v3 }
 0x36f   : > { %v1847_v12 = vpop.f32.mrf.mxu1  ;;  %2056 = vadd.xlane.f32.xlu0 %v2055_v10  ;;  %2059 = vadd.xlane.f32.xlu1 %v2058_v7 }
 0x370   : > { %v1903_v13 = vmax.f32 %v1853_v9, 0.0  ;;  %v1848_v14 = vadd.f32 %v6931_v54, %v1847_v12  ;;  %v1980_v15 = vmul.f32 %v6938_v63, %v1900_v34  ;;  %v2064_v17 = vsel %vm1988_vm8, %v1981_v11, 0.0 }
 0x371   : > { %v6292_v16 = vpop.f32.mrf.mxu1 }
 0x372   : > { %v1902_v18 = vmax.f32 %v1848_v14, 0.0  ;;  %v1863_v19 = vadd.f32 %v6292_v16, %v6931_v54  ;;  %v2061_v20 = vsel %vm1988_vm8, %v1980_v15, 0.0  ;;  %v1983_v21 = vmul.f32 %v6938_v63, %v1903_v13 }
 0x373   : > { %v1857_v22 = vpop.f32.mrf.mxu1  ;;  %2062 = vadd.xlane.f32.xlu0 %v2061_v20  ;;  %2065 = vadd.xlane.f32.xlu1 %v2064_v17 }
 0x374   : > { %v1905_v23 = vmax.f32 %v1863_v19, 0.0  ;;  %v1858_v24 = vadd.f32 %v6931_v54, %v1857_v22  ;;  %v1982_v25 = vmul.f32 %v6938_v63, %v1902_v18  ;;  %v2070_v27 = vsel %vm1988_vm8, %v1983_v21, 0.0 }
 0x375   : > { %v6295_v26 = vpop.f32.mrf.mxu1 }
 0x376   : > { %v1904_v28 = vmax.f32 %v1858_v24, 0.0  ;;  %v1873_v29 = vadd.f32 %v6295_v26, %v6931_v54  ;;  %v2067_v59 = vsel %vm1988_vm8, %v1982_v25, 0.0  ;;  %v1985_v30 = vmul.f32 %v6938_v63, %v1905_v23 }
 0x377   : > { %v1867_v31 = vpop.f32.mrf.mxu1  ;;  %2068 = vadd.xlane.f32.xlu0 %v2067_v59  ;;  %2071 = vadd.xlane.f32.xlu1 %v2070_v27 }
 0x378   : > { %v1907_v32 = vmax.f32 %v1873_v29, 0.0  ;;  %v1868_v33 = vadd.f32 %v6931_v54, %v1867_v31  ;;  %v1984_v35 = vmul.f32 %v6938_v63, %v1904_v28  ;;  %v2076_v38 = vsel %vm1988_vm8, %v1985_v30, 0.0 }
 0x379   : > { %v6413_v54 = vmov 1966171168  }
 0x37a   : > { %v1906_v36 = vmax.f32 %v1868_v33, 0.0  ;;  %v2073_v37 = vsel %vm1988_vm8, %v1984_v35, 0.0  ;;  %v1987_v39 = vmul.f32 %v6938_v63, %v1907_v32  ;;  %v2158_v8 = vunpack.c.l.s4 %v6413_v54 }
 0x37b   : > { %2074 = vadd.xlane.f32.xlu0 %v2073_v37  ;;  %2077 = vadd.xlane.f32.xlu1 %v2076_v38 }
 0x37c   : > { %v1986_v40 = vmul.f32 %v6938_v63, %v1906_v36  ;;  %v2082_v44 = vsel %vm1988_vm8, %v1987_v39, 0.0  ;;  %v2159_v46 = vunpack.c.0.s8 %v2158_v8 }
 0x37e   : > { %v2079_v41 = vsel %vm1988_vm8, %v1986_v40, 0.0  ;;  %v7037_v51 = vsub.s32 %v2159_v46, %v6912_v45 }
 0x37f   : > { %2080 = vadd.xlane.f32.xlu0 %v2079_v41  ;;  %2083 = vadd.xlane.f32.xlu1 %v2082_v44 }
 0x3ca   : > { %v1994_v52 = vpop.xlane.xlu0 %1993 }
 0x3cb   : > { %v2093_v53 = vadd.f32 %v7034_v49, %v1994_v52 }
 0x3cc   : > { %v1991_v55 = vpop.xlane.xlu1 %1990 }
 0x3cd   : > { %v2205_v56 = vcombine.high %v2093_v53, %v2093_v53  ;;  %v2212_v63 = vrot.slane %v2093_v53, %v7037_v51  ;;  %v2092_v57 = vadd.f32 %v7034_v49, %v1991_v55 }
 0x3cf   : > { %v2219_v58 = vrot.slane %v2205_v56, %v7037_v51  ;;  %v2220_v60 = vcombine.high %v2212_v63, %v2212_v63  ;;  %v2156_v61 = vcombine.high %v2092_v57, %v2092_v57  ;;  %v2163_v62 = vrot.slane %v2092_v57, %v7037_v51 }
 0x3d0   : > { %v1997_v0 = vpop.xlane.xlu0 %1996  ;;  %v2000_v1 = vpop.xlane.xlu1 %1999  ;;  %v2228_v34 = vrot.slane %v2212_v63, %v7037_v51 }
 0x3d1   : > { %v2221_v2 = vcombine.high %v2219_v58, %v2219_v58  ;;  %v2170_v3 = vrot.slane %v2156_v61, %v7037_v51  ;;  %v2242_v4 = vrot.slane %v2220_v60, %v7037_v51  ;;  %v2094_v5 = vadd.f32 %v7034_v49, %v1997_v0 }
 0x3d2   : > { %v2171_v6 = vcombine.high %v2163_v62, %v2163_v62  ;;  %v2095_v7 = vadd.f32 %v7034_v49, %v2000_v1  ;;  %v7054_v13 = vrot.slane %v2219_v58, %v7037_v51  ;;  %v2179_v23 = vrot.slane %v2163_v62, %v7037_v51 }
 0x3d3   : > { %v7050_v9 = vrot.slane %v2221_v2, %v7037_v51  ;;  %v2254_v10 = vcombine.high %v2094_v5, %v2094_v5  ;;  %v2261_v11 = vrot.slane %v2094_v5, %v7037_v51  ;;  %v2172_v12 = vcombine.high %v2170_v3, %v2170_v3 }
 0x3d4   : > { %v3773_v14 = vcombine.low %v2228_v34, %v2242_v4  ;;  %v5812_v15 = vcombine.high %v2228_v34, %v2242_v4  ;;  %v2193_v17 = vrot.slane %v2171_v6, %v7037_v51  ;;  %v2303_v19 = vcombine.high %v2095_v7, %v2095_v7  ;;  %v2003_v21 = vpop.xlane.xlu0 %2002  ;;  %v2006_v25 = vpop.xlane.xlu1 %2005 }
 0x3d5   : > { %v2268_v16 = vrot.slane %v2254_v10, %v7037_v51  ;;  %v2269_v18 = vcombine.high %v2261_v11, %v2261_v11  ;;  %v2310_v20 = vrot.slane %v2095_v7, %v7037_v51  ;;  %v3775_v22 = vcombine.low %v7054_v13, %v7050_v9 }
 0x3d6   : > { %v7063_v24 = vrot.slane %v2170_v3, %v7037_v51  ;;  %v5813_v26 = vcombine.high %v7054_v13, %v7050_v9  ;;  %v7068_v27 = vrot.slane %v2172_v12, %v7037_v51  ;;  %v2317_v29 = vrot.slane %v2303_v19, %v7037_v51 }
 0x3d7   : > { %v2270_v28 = vcombine.high %v2268_v16, %v2268_v16  ;;  %v7072_v59 = vrot.slane %v3773_v14, %v7037_v51  ;;  %v2291_v30 = vrot.slane %v2269_v18, %v7037_v51  ;;  %v2318_v31 = vcombine.high %v2310_v20, %v2310_v20 }
 0x3d8   : > { %v2096_v32 = vadd.f32 %v7034_v49, %v2003_v21  ;;  %v7077_v33 = vrot.slane %v5812_v15, %v7037_v51  ;;  %v3724_v35 = vcombine.low %v2179_v23, %v2193_v17  ;;  %v5810_v36 = vcombine.high %v2179_v23, %v2193_v17  ;;  %v2009_v61 = vpop.xlane.xlu0 %2008  ;;  %v2012_v3 = vpop.xlane.xlu1 %2011 }
 0x3d9   : > { %v2097_v37 = vadd.f32 %v7034_v49, %v2006_v25  ;;  %v2277_v38 = vrot.slane %v2261_v11, %v7037_v51  ;;  %v7082_v39 = vrot.slane %v2270_v28, %v7037_v51  ;;  %v3726_v44 = vcombine.low %v7063_v24, %v7068_v27 }
 0x3da   : > { %v2352_v40 = vcombine.high %v2096_v32, %v2096_v32  ;;  %v2359_v41 = vrot.slane %v2096_v32, %v7037_v51  ;;  %v5811_v54 = vcombine.high %v7063_v24, %v7068_v27  ;;  %v2319_v8 = vcombine.high %v2317_v29, %v2317_v29 }
 0x3db   : > { %v2340_v46 = vrot.slane %v2318_v31, %v7037_v51  ;;  %v7091_v52 = vrot.slane %v2268_v16, %v7037_v51  ;;  %v3822_v53 = vcombine.low %v2277_v38, %v2291_v30  ;;  %v2326_v55 = vrot.slane %v2310_v20, %v7037_v51 }
 0x3dc   : > { %v2366_v56 = vrot.slane %v2352_v40, %v7037_v51  ;;  %v5814_v63 = vcombine.high %v2277_v38, %v2291_v30  ;;  %v2367_v57 = vcombine.high %v2359_v41, %v2359_v41  ;;  %v2401_v58 = vcombine.high %v2097_v37, %v2097_v37 }
 0x3dd   : > { %v2408_v60 = vrot.slane %v2097_v37, %v7037_v51  ;;  %v7097_v62 = vrot.slane %v3724_v35, %v7037_v51  ;;  %v7100_v0 = vrot.slane %v5810_v36, %v7037_v51  ;;  %v3824_v1 = vcombine.low %v7091_v52, %v7082_v39 }
 0x3de   : > { %v7105_v2 = vrot.slane %v2317_v29, %v7037_v51  ;;  %v7108_v4 = vrot.slane %v2319_v8, %v7037_v51  ;;  %v3871_v5 = vcombine.low %v2326_v55, %v2340_v46  ;;  %v2368_v6 = vcombine.high %v2366_v56, %v2366_v56 }
 0x3df   : > { %v2415_v7 = vrot.slane %v2401_v58, %v7037_v51  ;;  %v5815_v34 = vcombine.high %v7091_v52, %v7082_v39  ;;  %v2389_v10 = vrot.slane %v2367_v57, %v7037_v51  ;;  %v2416_v11 = vcombine.high %v2408_v60, %v2408_v60 }
 0x3e0   : > { %v2098_v12 = vadd.f32 %v7034_v49, %v2009_v61  ;;  %v7116_v14 = vrot.slane %v3822_v53, %v7037_v51  ;;  %v7119_v15 = vrot.slane %v5814_v63, %v7037_v51  ;;  %v5816_v16 = vcombine.high %v2326_v55, %v2340_v46 }
 0x3e1   : > { %v2099_v17 = vadd.f32 %v7034_v49, %v2012_v3  ;;  %v2375_v18 = vrot.slane %v2359_v41, %v7037_v51  ;;  %v7124_v19 = vrot.slane %v2368_v6, %v7037_v51  ;;  %v7132_v28 = vrot.slane %v3871_v5, %v7037_v51  ;;  %v2015_v41 = vpop.xlane.xlu0 %2014 }
 0x3e2   : > { %v2450_v20 = vcombine.high %v2098_v12, %v2098_v12  ;;  %v2457_v21 = vrot.slane %v2098_v12, %v7037_v51  ;;  %v2417_v29 = vcombine.high %v2415_v7, %v2415_v7  ;;  %v7135_v30 = vrot.slane %v2366_v56, %v7037_v51  ;;  %v2018_v56 = vpop.xlane.xlu1 %2017 }
 0x3e3   : > { %v3920_v31 = vcombine.low %v2375_v18, %v2389_v10  ;;  %v2438_v32 = vrot.slane %v2416_v11, %v7037_v51  ;;  %v5818_v36 = vcombine.high %v2375_v18, %v2389_v10  ;;  %v2499_v38 = vcombine.high %v2099_v17, %v2099_v17 }
 0x3e4   : > { %v2464_v35 = vrot.slane %v2450_v20, %v7037_v51  ;;  %v2465_v37 = vcombine.high %v2457_v21, %v2457_v21  ;;  %v2506_v40 = vrot.slane %v2099_v17, %v7037_v51  ;;  %v7141_v8 = vrot.slane %v5816_v16, %v7037_v51 }
 0x3e5   : > { %v2424_v53 = vrot.slane %v2408_v60, %v7037_v51  ;;  %v7147_v55 = vrot.slane %v2415_v7, %v7037_v51  ;;  %v7152_v57 = vrot.slane %v2417_v29, %v7037_v51  ;;  %v2513_v61 = vrot.slane %v2499_v38, %v7037_v51 }
 0x3e6   : > { %v2466_v58 = vcombine.high %v2464_v35, %v2464_v35  ;;  %v7156_v3 = vrot.slane %v3920_v31, %v7037_v51  ;;  %v2514_v6 = vcombine.high %v2506_v40, %v2506_v40  ;;  %v2100_v60 = vadd.f32 %v7034_v49, %v2015_v41 }
 0x3e7   : > { %v3969_v5 = vcombine.low %v2424_v53, %v2438_v32  ;;  %v7160_v7 = vrot.slane %v5818_v36, %v7037_v51  ;;  %v5820_v10 = vcombine.high %v2424_v53, %v2438_v32  ;;  %v2487_v11 = vrot.slane %v2465_v37, %v7037_v51 }
 0x3e8   : > { %v2101_v12 = vadd.f32 %v7034_v49, %v2018_v56  ;;  %v2473_v16 = vrot.slane %v2457_v21, %v7037_v51  ;;  %v2515_v17 = vcombine.high %v2513_v61, %v2513_v61  ;;  %v2548_v18 = vcombine.high %v2100_v60, %v2100_v60 }
 0x3e9   : > { %v2555_v20 = vrot.slane %v2100_v60, %v7037_v51  ;;  %v7171_v36 = vrot.slane %v2466_v58, %v7037_v51  ;;  %v2536_v32 = vrot.slane %v2514_v6, %v7037_v51  ;;  %v7175_v37 = vrot.slane %v3969_v5, %v7037_v51 }
 0x3ea   : > { %v7178_v21 = vrot.slane %v2464_v35, %v7037_v51  ;;  %v2522_v38 = vrot.slane %v2506_v40, %v7037_v51  ;;  %v2562_v41 = vrot.slane %v2548_v18, %v7037_v51  ;;  %v4018_v53 = vcombine.low %v2473_v16, %v2487_v11 }
 0x3eb   : > { %v5822_v56 = vcombine.high %v2473_v16, %v2487_v11  ;;  %v2563_v60 = vcombine.high %v2555_v20, %v2555_v20  ;;  %v2597_v42 = vcombine.high %v2101_v12, %v2101_v12  ;;  %v7183_v31 = vrot.slane %v5820_v10, %v7037_v51 }
 0x3ec   : > { %v7186_v58 = vrot.slane %v2513_v61, %v7037_v51  ;;  %v7189_v5 = vrot.slane %v2515_v17, %v7037_v51  ;;  %v2604_v35 = vrot.slane %v2101_v12, %v7037_v51  ;;  %v4067_v6 = vcombine.low %v2522_v38, %v2536_v32  ;;  %v2021_v12 = vpop.xlane.xlu0 %2020 }
 0x3ed   : > { %v5824_v18 = vcombine.high %v2522_v38, %v2536_v32  ;;  %v2564_v29 = vcombine.high %v2562_v41, %v2562_v41  ;;  %v2585_v11 = vrot.slane %v2563_v60, %v7037_v51  ;;  %v2611_v16 = vrot.slane %v2597_v42, %v7037_v51 }
 0x3ee   : > { %v3797_v61 = vrot.slane %v3775_v22, %v7037_v51  ;;  %v3804_v10 = vrot.slane %v5813_v26, %v7037_v51  ;;  %v7207_v32 = vrot.slane %v4018_v53, %v7037_v51  ;;  %v7210_v38 = vrot.slane %v5822_v56, %v7037_v51  ;;  %v2024_v26 = vpop.xlane.xlu1 %2023 }
 0x3ef   : > { %v2571_v42 = vrot.slane %v2555_v20, %v7037_v51  ;;  %v2612_v60 = vcombine.high %v2604_v35, %v2604_v35  ;;  %v3805_v9 = vcombine.low %v7072_v59, %v7077_v33  ;;  %v7220_v53 = vrot.slane %v4067_v6, %v7037_v51 }
 0x3f0   : > { %v3806_v13 = vcombine.low %v3797_v61, %v3804_v10  ;;  %v7223_v56 = vrot.slane %v5824_v18, %v7037_v51  ;;  %v7226_v20 = vrot.slane %v2562_v41, %v7037_v51  ;;  %v7229_v22 = vrot.slane %v2564_v29, %v7037_v51 }
 0x3f1   : > { %v4116_v40 = vcombine.low %v2571_v42, %v2585_v11  ;;  %v2613_v63 = vcombine.high %v2611_v16, %v2611_v16  ;;  %v2620_v59 = vrot.slane %v2604_v35, %v7037_v51  ;;  %v3813_v33 = vrot.slane %v3805_v9, %v7037_v51  ;;  %v2027_v35 = vpop.xlane.xlu0 %2026 }
 0x3f2   : > { %v3820_v61 = vrot.slane %v3806_v13, %v7037_v51  ;;  %v2102_v6 = vadd.f32 %v7034_v49, %v2021_v12  ;;  %v2103_v10 = vadd.f32 %v7034_v49, %v2024_v26  ;;  %v5826_v18 = vcombine.high %v2571_v42, %v2585_v11 }
 0x3f3   : > { %v7237_v17 = vrot.slane %v2611_v16, %v7037_v51  ;;  %v2634_v41 = vrot.slane %v2612_v60, %v7037_v51  ;;  %v3748_v29 = vrot.slane %v3726_v44, %v7037_v51  ;;  %v7246_v12 = vrot.slane %v2613_v63, %v7037_v51 }
 0x3f4   : > { %v3821_v46 = vcombine.low %v3813_v33, %v3820_v61  ;;  %v2646_v9 = vcombine.high %v2102_v6, %v2102_v6  ;;  %v2653_v13 = vrot.slane %v2102_v6, %v7037_v51  ;;  %v2695_v25 = vcombine.high %v2103_v10, %v2103_v10 }
 0x3f5   : > { %v2702_v11 = vrot.slane %v2103_v10, %v7037_v51  ;;  %v3755_v16 = vrot.slane %v5811_v54, %v7037_v51  ;;  %v3756_v42 = vcombine.low %v7097_v62, %v7100_v0  ;;  %v2104_v33 = vadd.f32 %v7034_v49, %v2027_v35 }
 0x3f6   : > { %5296 = vperm.xlu1 %6348, %v3821_v46   ;;  %v2660_v44 = vrot.slane %v2646_v9, %v7037_v51  ;;  %v2661_v60 = vcombine.high %v2653_v13, %v2653_v13  ;;  %v2709_v26 = vrot.slane %v2695_v25, %v7037_v51  ;;  %v7263_v27 = vrot.slane %v4116_v40, %v7037_v51 }
 0x3f7   : > { %v2710_v6 = vcombine.high %v2702_v11, %v2702_v11  ;;  %v3757_v24 = vcombine.low %v3748_v29, %v3755_v16  ;;  %v4165_v54 = vcombine.low %v2620_v59, %v2634_v41  ;;  %v5828_v62 = vcombine.high %v2620_v59, %v2634_v41 }
 0x3f8   : > { %v2662_v0 = vcombine.high %v2660_v44, %v2660_v44  ;;  %v7266_v46 = vrot.slane %v5826_v18, %v7037_v51  ;;  %v2683_v25 = vrot.slane %v2661_v60, %v7037_v51  ;;  %v3764_v10 = vrot.slane %v3756_v42, %v7037_v51  ;;  %v2030_v60 = vpop.xlane.xlu1 %2029 }
 0x3f9   : > { %v3771_v35 = vrot.slane %v3757_v24, %v7037_v51  ;;  %v2711_v40 = vcombine.high %v2709_v26, %v2709_v26  ;;  %v2744_v16 = vcombine.high %v2104_v33, %v2104_v33  ;;  %v2669_v59 = vrot.slane %v2653_v13, %v7037_v51 }
 0x3fa   : > { %v2732_v41 = vrot.slane %v2710_v6, %v7037_v51  ;;  %v2751_v61 = vrot.slane %v2104_v33, %v7037_v51  ;;  %v7279_v42 = vrot.slane %v4165_v54, %v7037_v51  ;;  %v7282_v24 = vrot.slane %v5828_v62, %v7037_v51 }
 0x3fb   : > { %v3772_v18 = vcombine.low %v3764_v10, %v3771_v35  ;;  %v7285_v9 = vrot.slane %v2662_v0, %v7037_v51  ;;  %v2718_v29 = vrot.slane %v2702_v11, %v7037_v51  ;;  %v7289_v63 = vrot.slane %v2660_v44, %v7037_v51 }
 0x3fc   : > { %v4214_v13 = vcombine.low %v2669_v59, %v2683_v25  ;;  %v5830_v6 = vcombine.high %v2669_v59, %v2683_v25  ;;  %v7292_v10 = vrot.slane %v2709_v26, %v7037_v51  ;;  %v7295_v33 = vrot.slane %v2711_v40, %v7037_v51 }
 0x3fd   : > { %5293 = vperm.xlu0 %6347, %v3772_v18   ;;  %v2758_v54 = vrot.slane %v2744_v16, %v7037_v51  ;;  %v2759_v62 = vcombine.high %v2751_v61, %v2751_v61  ;;  %v2105_v0 = vadd.f32 %v7034_v49, %v2030_v60  ;;  %v4263_v35 = vcombine.low %v2718_v29, %v2732_v41 }
 0x3fe   : > { %v3846_v11 = vrot.slane %v3824_v1, %v7037_v51  ;;  %v3853_v44 = vrot.slane %v5815_v34, %v7037_v51  ;;  %v3854_v26 = vcombine.low %v7116_v14, %v7119_v15  ;;  %v5832_v16 = vcombine.high %v2718_v29, %v2732_v41 }
 0x3ff   : > { %v2793_v59 = vcombine.high %v2105_v0, %v2105_v0  ;;  %v7314_v18 = vrot.slane %v4214_v13, %v7037_v51  ;;  %v2760_v1 = vcombine.high %v2758_v54, %v2758_v54  ;;  %v2800_v60 = vrot.slane %v2105_v0, %v7037_v51 }
 0x400   : > { %v3855_v23 = vcombine.low %v3846_v11, %v3853_v44  ;;  %v2781_v39 = vrot.slane %v2759_v62, %v7037_v51  ;;  %v8266_v34 = vcombine.low %v7105_v2, %v7108_v4  ;;  %v8267_v15 = vcombine.high %v7105_v2, %v7108_v4  ;;  %v2033_v11 = vpop.xlane.xlu0 %2032  ;;  %v2036_v44 = vpop.xlane.xlu1 %2035 }
 0x401   : > { %v2807_v52 = vrot.slane %v2793_v59, %v7037_v51  ;;  %v2808_v41 = vcombine.high %v2800_v60, %v2800_v60  ;;  %v3862_v13 = vrot.slane %v3854_v26, %v7037_v51  ;;  %v3903_v62 = vcombine.low %v7132_v28, %v7141_v8 }
 0x402   : > { %v3895_v14 = vrot.slane %v8266_v34, %v7037_v51  ;;  %v3902_v29 = vrot.slane %v8267_v15, %v7037_v51  ;;  %v3869_v0 = vrot.slane %v3855_v23, %v7037_v51  ;;  %v7332_v59 = vrot.slane %v5830_v6, %v7037_v51 }
 0x403   : > { %v7339_v4 = vrot.slane %v4263_v35, %v7037_v51  ;;  %v2767_v26 = vrot.slane %v2751_v61, %v7037_v51  ;;  %v7343_v23 = vrot.slane %v2760_v1, %v7037_v51  ;;  %v2809_v28 = vcombine.high %v2807_v52, %v2807_v52 }
 0x404   : > { %v3870_v8 = vcombine.low %v3862_v13, %v3869_v0  ;;  %v7346_v15 = vrot.slane %v5832_v16, %v7037_v51  ;;  %v3904_v6 = vcombine.low %v3895_v14, %v3902_v29  ;;  %v2106_v40 = vadd.f32 %v7034_v49, %v2033_v11 }
 0x405   : > { %v2107_v25 = vadd.f32 %v7034_v49, %v2036_v44  ;;  %v7351_v2 = vrot.slane %v2758_v54, %v7037_v51  ;;  %v4312_v35 = vcombine.low %v2767_v26, %v2781_v39  ;;  %v2830_v34 = vrot.slane %v2808_v41, %v7037_v51 }
 0x406   : > { %5299 = vperm.xlu1 %6348, %v3870_v8   ;;  %v3911_v61 = vrot.slane %v3903_v62, %v7037_v51  ;;  %v3918_v1 = vrot.slane %v3904_v6, %v7037_v51  ;;  %v2842_v13 = vcombine.high %v2106_v40, %v2106_v40  ;;  %v2849_v16 = vrot.slane %v2106_v40, %v7037_v51 }
 0x407   : > { %v2891_v0 = vcombine.high %v2107_v25, %v2107_v25  ;;  %v5834_v14 = vcombine.high %v2767_v26, %v2781_v39  ;;  %v2816_v11 = vrot.slane %v2800_v60, %v7037_v51  ;;  %v7361_v54 = vrot.slane %v2809_v28, %v7037_v51 }
 0x408   : > { %v3919_v44 = vcombine.low %v3911_v61, %v3918_v1  ;;  %v2856_v41 = vrot.slane %v2842_v13, %v7037_v51  ;;  %v2857_v8 = vcombine.high %v2849_v16, %v2849_v16  ;;  %v8268_v62 = vcombine.low %v7135_v30, %v7124_v19 }
 0x409   : > { %v4361_v39 = vcombine.low %v2816_v11, %v2830_v34  ;;  %v2898_v26 = vrot.slane %v2107_v25, %v7037_v51  ;;  %v8269_v60 = vcombine.high %v7135_v30, %v7124_v19  ;;  %v7376_v61 = vrot.slane %v4312_v35, %v7037_v51 }
 0x40a   : > { %v3944_v6 = vrot.slane %v8268_v62, %v7037_v51  ;;  %v7379_v1 = vrot.slane %v2807_v52, %v7037_v51  ;;  %v5836_v13 = vcombine.high %v2816_v11, %v2830_v34  ;;  %5302 = vperm.xlu0 %6347, %v3919_v44   ;;  %v2905_v62 = vrot.slane %v2891_v0, %v7037_v51 }
 0x40b   : > { %v3951_v28 = vrot.slane %v8269_v60, %v7037_v51  ;;  %v7383_v40 = vrot.slane %v5834_v14, %v7037_v51  ;;  %v2858_v29 = vcombine.high %v2856_v41, %v2856_v41  ;;  %v2879_v25 = vrot.slane %v2857_v8, %v7037_v51  ;;  %v2039_v8 = vpop.xlane.xlu0 %2038 }
 0x40c   : > { %v3952_v19 = vcombine.low %v7156_v3, %v7160_v7  ;;  %v8270_v34 = vcombine.low %v7147_v55, %v7152_v57  ;;  %v7397_v14 = vrot.slane %v4361_v39, %v7037_v51  ;;  %v2865_v11 = vrot.slane %v2849_v16, %v7037_v51  ;;  %v2042_v39 = vpop.xlane.xlu1 %2041 }
 0x40d   : > { %v3953_v35 = vcombine.low %v3944_v6, %v3951_v28  ;;  %v2906_v44 = vcombine.high %v2898_v26, %v2898_v26  ;;  %v8271_v3 = vcombine.high %v7147_v55, %v7152_v57  ;;  %v7405_v60 = vrot.slane %v5836_v13, %v7037_v51 }
 0x40e   : > { %v3993_v0 = vrot.slane %v8270_v34, %v7037_v51  ;;  %v7408_v6 = vrot.slane %v2856_v41, %v7037_v51  ;;  %v2907_v28 = vcombine.high %v2905_v62, %v2905_v62  ;;  %v2914_v34 = vrot.slane %v2898_v26, %v7037_v51 }
 0x40f   : > { %v4000_v7 = vrot.slane %v8271_v3, %v7037_v51  ;;  %v7412_v52 = vrot.slane %v2858_v29, %v7037_v51  ;;  %v4410_v16 = vcombine.low %v2865_v11, %v2879_v25  ;;  %v7415_v30 = vrot.slane %v2905_v62, %v7037_v51 }
 0x410   : > { %8272 = vst [vmem:[#allocation11_spill] sm:$0xff] %v7408_v6  ;;  %v3960_v55 = vrot.slane %v3952_v19, %v7037_v51  ;;  %v3967_v57 = vrot.slane %v3953_v35, %v7037_v51  ;;  %v4001_v13 = vcombine.low %v7175_v37, %v7183_v31  ;;  %v2108_v3 = vadd.f32 %v7034_v49, %v2039_v8 }
 0x411   : > { %8273 = vst [vmem:[#allocation12_spill] sm:$0xff] %v7412_v52  ;;  %8274 = vst [vmem:[#allocation13_spill] sm:$0xff] %v7415_v30  ;;  %v4002_v41 = vcombine.low %v3993_v0, %v4000_v7  ;;  %v5838_v50 = vcombine.high %v2865_v11, %v2879_v25  ;;  %v2928_v26 = vrot.slane %v2906_v44, %v7037_v51 }
 0x412   : > { %v2109_v29 = vadd.f32 %v7034_v49, %v2042_v39  ;;  %v8275_v62 = vcombine.low %v7178_v21, %v7171_v36  ;;  %v3968_v45 = vcombine.low %v3960_v55, %v3967_v57  ;;  %v4009_v19 = vrot.slane %v4001_v13, %v7037_v51 }
 0x413   : > { %v4016_v35 = vrot.slane %v4002_v41, %v7037_v51  ;;  %v2940_v47 = vcombine.high %v2108_v3, %v2108_v3  ;;  %v2947_v31 = vrot.slane %v2108_v3, %v7037_v51  ;;  %v8276_v0 = vcombine.high %v7178_v21, %v7171_v36 }
 0x414   : > { %v4042_v48 = vrot.slane %v8275_v62, %v7037_v51  ;;  %v2989_v37 = vcombine.high %v2109_v29, %v2109_v29  ;;  %v2996_v25 = vrot.slane %v2109_v29, %v7037_v51  ;;  %v7437_v44 = vrot.slane %v2907_v28, %v7037_v51  ;;  %5305 = vperm.xlu1 %6348, %v3968_v45  }
 0x415   : > { %v4049_v11 = vrot.slane %v8276_v0, %v7037_v51  ;;  %v4017_v7 = vcombine.low %v4009_v19, %v4016_v35  ;;  %v2954_v8 = vrot.slane %v2940_v47, %v7037_v51  ;;  %v4050_v39 = vcombine.low %v7207_v32, %v7210_v38 }
 0x416   : > { %8277 = vst [vmem:[#allocation14_spill] sm:$0xff] %v7437_v44  ;;  %v4459_v57 = vcombine.low %v2914_v34, %v2928_v26  ;;  %v5840_v13 = vcombine.high %v2914_v34, %v2928_v26  ;;  %v2955_v41 = vcombine.high %v2947_v31, %v2947_v31  ;;  %v7447_v21 = vrot.slane %v4410_v16, %v7037_v51 }
 0x417   : > { %5308 = vperm.xlu0 %6347, %v4017_v7   ;;  %v3003_v45 = vrot.slane %v2989_v37, %v7037_v51  ;;  %v4051_v28 = vcombine.low %v4042_v48, %v4049_v11  ;;  %v7451_v47 = vrot.slane %v5838_v50, %v7037_v51  ;;  %v2956_v32 = vcombine.high %v2954_v8, %v2954_v8 }
 0x418   : > { %8278 = vst [vmem:[#allocation15_spill] sm:$0xff] %v7447_v21  ;;  %v3004_v38 = vcombine.high %v2996_v25, %v2996_v25  ;;  %v8280_v34 = vcombine.low %v7186_v58, %v7189_v5  ;;  %v2977_v26 = vrot.slane %v2955_v41, %v7037_v51  ;;  %v4058_v29 = vrot.slane %v4050_v39, %v7037_v51  ;;  %v2048_v39 = vpop.xlane.xlu1 %2047  ;;  %v7690_v21 = vld [vmem:[#allocation2] ss:$0 sm:$0xff] }
 0x419   : > { %8279 = vst [vmem:[#allocation16_spill] sm:$0xff] %v7451_v47  ;;  %v4065_v16 = vrot.slane %v4051_v28, %v7037_v51  ;;  %v8281_v48 = vcombine.high %v7186_v58, %v7189_v5  ;;  %v7469_v35 = vrot.slane %v4459_v57, %v7037_v51  ;;  %v7472_v37 = vrot.slane %v5840_v13, %v7037_v51  ;;  %v2045_v5 = vpop.xlane.xlu0 %2044 }
 0x41a   : > { %v4091_v3 = vrot.slane %v8280_v34, %v7037_v51  ;;  %v2963_v0 = vrot.slane %v2947_v31, %v7037_v51  ;;  %v7476_v11 = vrot.slane %v2954_v8, %v7037_v51  ;;  %v3005_v7 = vcombine.high %v3003_v45, %v3003_v45 }
 0x41b   : > { %v4098_v62 = vrot.slane %v8281_v48, %v7037_v51  ;;  %8282 = vst [vmem:[#allocation17_spill] sm:$0xff] %v7469_v35  ;;  %8283 = vst [vmem:[#allocation18_spill] sm:$0xff] %v7472_v37  ;;  %v4066_v58 = vcombine.low %v4058_v29, %v4065_v16  ;;  %v7479_v41 = vrot.slane %v2956_v32, %v7037_v51 }
 0x41c   : > { %v3012_v28 = vrot.slane %v2996_v25, %v7037_v51  ;;  %v7483_v57 = vrot.slane %v3003_v45, %v7037_v51  ;;  %v3026_v13 = vrot.slane %v3004_v38, %v7037_v51  ;;  %v4508_v34 = vcombine.low %v2963_v0, %v2977_v26 }
 0x41d   : > { %v5842_v48 = vcombine.high %v2963_v0, %v2977_v26  ;;  %5311 = vperm.xlu1 %6348, %v4066_v58   ;;  %v4099_v31 = vcombine.low %v7220_v53, %v7223_v56  ;;  %v4100_v8 = vcombine.low %v4091_v3, %v4098_v62  ;;  %v2110_v29 = vadd.f32 %v7034_v49, %v2045_v5 }
 0x41e   : > { %v2111_v16 = vadd.f32 %v7034_v49, %v2048_v39  ;;  %v8284_v25 = vcombine.low %v7226_v20, %v7229_v22  ;;  %v8285_v45 = vcombine.high %v7226_v20, %v7229_v22  ;;  %v7499_v26 = vrot.slane %v3005_v7, %v7037_v51 }
 0x41f   : > { %v4107_v53 = vrot.slane %v4099_v31, %v7037_v51  ;;  %v4114_v56 = vrot.slane %v4100_v8, %v7037_v51  ;;  %v4148_v3 = vcombine.low %v7263_v27, %v7266_v46  ;;  %v3038_v62 = vcombine.high %v2110_v29, %v2110_v29 }
 0x420   : > { %v4140_v32 = vrot.slane %v8284_v25, %v7037_v51  ;;  %v4147_v38 = vrot.slane %v8285_v45, %v7037_v51  ;;  %v3045_v0 = vrot.slane %v2110_v29, %v7037_v51  ;;  %v3087_v58 = vcombine.high %v2111_v16, %v2111_v16 }
 0x421   : > { %v3094_v5 = vrot.slane %v2111_v16, %v7037_v51  ;;  %v4115_v39 = vcombine.low %v4107_v53, %v4114_v56  ;;  %v8286_v22 = vcombine.low %v7237_v17, %v7246_v12  ;;  %v8287_v7 = vcombine.high %v7237_v17, %v7246_v12  ;;  %v2051_v16 = vpop.xlane.xlu0 %2050 }
 0x422   : > { %v4149_v25 = vcombine.low %v4140_v32, %v4147_v38  ;;  %v4557_v46 = vcombine.low %v3012_v28, %v3026_v13  ;;  %v3052_v8 = vrot.slane %v3038_v62, %v7037_v51  ;;  %v3053_v29 = vcombine.high %v3045_v0, %v3045_v0 }
 0x423   : > { %v4189_v20 = vrot.slane %v8286_v22, %v7037_v51  ;;  %v4196_v31 = vrot.slane %v8287_v7, %v7037_v51  ;;  %v5844_v45 = vcombine.high %v3012_v28, %v3026_v13  ;;  %5314 = vperm.xlu0 %6347, %v4115_v39   ;;  %v3101_v32 = vrot.slane %v3087_v58, %v7037_v51 }
 0x424   : > { %v4156_v38 = vrot.slane %v4148_v3, %v7037_v51  ;;  %v4163_v53 = vrot.slane %v4149_v25, %v7037_v51  ;;  %v7524_v12 = vrot.slane %v4508_v34, %v7037_v51  ;;  %v3102_v56 = vcombine.high %v3094_v5, %v3094_v5 }
 0x425   : > { %v4197_v62 = vcombine.low %v7279_v42, %v7282_v24  ;;  %v3054_v22 = vcombine.high %v3052_v8, %v3052_v8  ;;  %v3075_v28 = vrot.slane %v3053_v29, %v7037_v51  ;;  %v4198_v39 = vcombine.low %v4189_v20, %v4196_v31 }
 0x426   : > { %v4164_v13 = vcombine.low %v4156_v38, %v4163_v53  ;;  %v7530_v58 = vrot.slane %v5842_v48, %v7037_v51  ;;  %v7537_v34 = vrot.slane %v4557_v46, %v7037_v51  ;;  %v7540_v7 = vrot.slane %v5844_v45, %v7037_v51  ;;  %v2054_v48 = vpop.xlane.xlu1 %2053  ;;  %v2057_v53 = vpop.xlane.xlu0 %2056 }
 0x427   : > { %v3061_v42 = vrot.slane %v3045_v0, %v7037_v51  ;;  %v3103_v24 = vcombine.high %v3101_v32, %v3101_v32  ;;  %v4212_v20 = vrot.slane %v4198_v39, %v7037_v51  ;;  %v7545_v31 = vrot.slane %v3052_v8, %v7037_v51 }
 0x428   : > { %5317 = vperm.xlu1 %6348, %v4164_v13   ;;  %v3110_v29 = vrot.slane %v3094_v5, %v7037_v51  ;;  %v7549_v38 = vrot.slane %v3101_v32, %v7037_v51  ;;  %v4205_v46 = vrot.slane %v4197_v62, %v7037_v51  ;;  %v7553_v45 = vrot.slane %v3054_v22, %v7037_v51 }
 0x429   : > { %v4606_v0 = vcombine.low %v3061_v42, %v3075_v28  ;;  %v5846_v19 = vcombine.high %v3061_v42, %v3075_v28  ;;  %v3124_v13 = vrot.slane %v3102_v56, %v7037_v51  ;;  %v2112_v50 = vadd.f32 %v7034_v49, %v2051_v16 }
 0x42a   : > { %v4213_v39 = vcombine.low %v4205_v46, %v4212_v20  ;;  %v2113_v8 = vadd.f32 %v7034_v49, %v2054_v48  ;;  %v8288_v5 = vcombine.low %v7292_v10, %v7295_v33  ;;  %v7563_v62 = vrot.slane %v3103_v24, %v7037_v51 }
 0x42b   : > { %v8289_v22 = vcombine.high %v7292_v10, %v7295_v33  ;;  %v4295_v56 = vcombine.low %v7339_v4, %v7346_v15  ;;  %v2114_v16 = vadd.f32 %v7034_v49, %v2057_v53  ;;  %v3136_v42 = vcombine.high %v2112_v50, %v2112_v50 }
 0x42c   : > { %v4287_v32 = vrot.slane %v8288_v5, %v7037_v51  ;;  %5320 = vperm.xlu0 %6347, %v4213_v39   ;;  %v3143_v20 = vrot.slane %v2112_v50, %v7037_v51  ;;  %v3185_v48 = vcombine.high %v2113_v8, %v2113_v8  ;;  %v3192_v46 = vrot.slane %v2113_v8, %v7037_v51  ;;  %v2060_v8 = vpop.xlane.xlu1 %2059 }
 0x42d   : > { %v4294_v28 = vrot.slane %v8289_v22, %v7037_v51  ;;  %v4655_v5 = vcombine.low %v3110_v29, %v3124_v13  ;;  %v5848_v24 = vcombine.high %v3110_v29, %v3124_v13  ;;  %v3234_v55 = vcombine.high %v2114_v16, %v2114_v16 }
 0x42e   : > { %v3150_v25 = vrot.slane %v3136_v42, %v7037_v51  ;;  %v3151_v10 = vcombine.high %v3143_v20, %v3143_v20  ;;  %v3199_v33 = vrot.slane %v3185_v48, %v7037_v51  ;;  %v3241_v4 = vrot.slane %v2114_v16, %v7037_v51 }
 0x42f   : > { %v4296_v36 = vcombine.low %v4287_v32, %v4294_v28  ;;  %v3200_v53 = vcombine.high %v3192_v46, %v3192_v46  ;;  %v4303_v50 = vrot.slane %v4295_v56, %v7037_v51  ;;  %v7584_v13 = vrot.slane %v4606_v0, %v7037_v51 }
 0x430   : > { %v3152_v32 = vcombine.high %v3150_v25, %v3150_v25  ;;  %v3173_v22 = vrot.slane %v3151_v10, %v7037_v51  ;;  %v7588_v28 = vrot.slane %v5846_v19, %v7037_v51  ;;  %v3201_v16 = vcombine.high %v3199_v33, %v3199_v33 }
 0x431   : > { %v4310_v39 = vrot.slane %v4296_v36, %v7037_v51  ;;  %v3222_v42 = vrot.slane %v3200_v53, %v7037_v51  ;;  %v3159_v56 = vrot.slane %v3143_v20, %v7037_v51  ;;  %v3248_v36 = vrot.slane %v3234_v55, %v7037_v51 }
 0x432   : > { %v3249_v3 = vcombine.high %v3241_v4, %v3241_v4  ;;  %v2115_v29 = vadd.f32 %v7034_v49, %v2060_v8  ;;  %v7599_v19 = vrot.slane %v4655_v5, %v7037_v51  ;;  %v3208_v15 = vrot.slane %v3192_v46, %v7037_v51 }
 0x433   : > { %v4311_v48 = vcombine.low %v4303_v50, %v4310_v39  ;;  %v7603_v53 = vrot.slane %v5848_v24, %v7037_v51  ;;  %v7606_v55 = vrot.slane %v3150_v25, %v7037_v51  ;;  %v7609_v20 = vrot.slane %v3152_v32, %v7037_v51 }
 0x434   : > { %v4704_v50 = vcombine.low %v3159_v56, %v3173_v22  ;;  %v5850_v39 = vcombine.high %v3159_v56, %v3173_v22  ;;  %v7612_v8 = vrot.slane %v3199_v33, %v7037_v51  ;;  %v7615_v5 = vrot.slane %v3201_v16, %v7037_v51 }
 0x435   : > { %5326 = vperm.xlu1 %6348, %v4311_v48   ;;  %v4753_v10 = vcombine.low %v3208_v15, %v3222_v42  ;;  %v5852_v46 = vcombine.high %v3208_v15, %v3222_v42  ;;  %v3250_v48 = vcombine.high %v3248_v36, %v3248_v36  ;;  %v3271_v24 = vrot.slane %v3249_v3, %v7037_v51  ;;  %v2063_v15 = vpop.xlane.xlu0 %2062 }
 0x436   : > { %v3283_v0 = vcombine.high %v2115_v29, %v2115_v29  ;;  %v3290_v25 = vrot.slane %v2115_v29, %v7037_v51  ;;  %v8290_v32 = vcombine.low %v7289_v63, %v7285_v9  ;;  %v8291_v33 = vcombine.high %v7289_v63, %v7285_v9 }
 0x437   : > { %v4246_v16 = vcombine.low %v7314_v18, %v7332_v59  ;;  %v7634_v42 = vrot.slane %v4704_v50, %v7037_v51  ;;  %v3257_v56 = vrot.slane %v3241_v4, %v7037_v51  ;;  %v2066_v18 = vpop.xlane.xlu1 %2065  ;;  %v7646_v29 = vrot.slane %v3250_v48, %v7037_v51 }
 0x438   : > { %v4238_v17 = vrot.slane %v8290_v32, %v7037_v51  ;;  %v4245_v22 = vrot.slane %v8291_v33, %v7037_v51  ;;  %v7638_v32 = vrot.slane %v5850_v39, %v7037_v51  ;;  %v3297_v63 = vrot.slane %v3283_v0, %v7037_v51 }
 0x439   : > { %v3298_v9 = vcombine.high %v3290_v25, %v3290_v25  ;;  %v2116_v50 = vadd.f32 %v7034_v49, %v2063_v15  ;;  %v4802_v4 = vcombine.low %v3257_v56, %v3271_v24  ;;  %v4254_v39 = vrot.slane %v4246_v16, %v7037_v51 }
 0x43a   : > { %v4247_v33 = vcombine.low %v4238_v17, %v4245_v22  ;;  %v3299_v27 = vcombine.high %v3297_v63, %v3297_v63  ;;  %v2117_v59 = vadd.f32 %v7034_v49, %v2066_v18  ;;  %v7655_v3 = vrot.slane %v4753_v10, %v7037_v51  ;;  %v2069_v18 = vpop.xlane.xlu0 %2068 }
 0x43b   : > { %v3320_v17 = vrot.slane %v3298_v9, %v7037_v51  ;;  %v3332_v22 = vcombine.high %v2116_v50, %v2116_v50  ;;  %v3339_v43 = vrot.slane %v2116_v50, %v7037_v51  ;;  %v7658_v48 = vrot.slane %v5852_v46, %v7037_v51 }
 0x43c   : > { %v4261_v0 = vrot.slane %v4247_v33, %v7037_v51  ;;  %v7661_v15 = vrot.slane %v3248_v36, %v7037_v51  ;;  %v5854_v16 = vcombine.high %v3257_v56, %v3271_v24  ;;  %v3306_v33 = vrot.slane %v3290_v25, %v7037_v51 }
 0x43d   : > { %v3346_v9 = vrot.slane %v3332_v22, %v7037_v51  ;;  %v3381_v37 = vcombine.high %v2117_v59, %v2117_v59  ;;  %v3347_v10 = vcombine.high %v3339_v43, %v3339_v43  ;;  %v8292_v36 = vcombine.low %v7379_v1, %v7361_v54 }
 0x43e   : > { %v4262_v35 = vcombine.low %v4254_v39, %v4261_v0  ;;  %v7674_v24 = vrot.slane %v4802_v4, %v7037_v51  ;;  %v7677_v25 = vrot.slane %v3299_v27, %v7037_v51  ;;  %v4851_v56 = vcombine.low %v3306_v33, %v3320_v17 }
 0x43f   : > { %v4385_v46 = vrot.slane %v8292_v36, %v7037_v51  ;;  %v3388_v39 = vrot.slane %v2117_v59, %v7037_v51  ;;  %v5856_v0 = vcombine.high %v3306_v33, %v3320_v17  ;;  %v3348_v22 = vcombine.high %v3346_v9, %v3346_v9 }
 0x440   : > { %5323 = vperm.xlu1 %6348, %v4262_v35   ;;  %v3395_v35 = vrot.slane %v3381_v37, %v7037_v51  ;;  %v8293_v49 = vcombine.high %v7379_v1, %v7361_v54  ;;  %v7686_v36 = vrot.slane %v3297_v63, %v7037_v51  ;;  %v4393_v27 = vcombine.low %v7397_v14, %v7405_v60  ;;  %v2072_v54 = vpop.xlane.xlu1 %2071 }
 0x441   : > { %v3396_v4 = vcombine.high %v3388_v39, %v3388_v39  ;;  %v2118_v59 = vadd.f32 %v7690_v21, %v2069_v18  ;;  %v7694_v17 = vrot.slane %v5854_v16, %v7037_v51  ;;  %v3369_v37 = vrot.slane %v3347_v10, %v7037_v51 }
 0x442   : > { %v4392_v50 = vrot.slane %v8293_v49, %v7037_v51  ;;  %v3397_v33 = vcombine.high %v3395_v35, %v3395_v35  ;;  %v7702_v14 = vrot.slane %v4851_v56, %v7037_v51  ;;  %v3355_v60 = vrot.slane %v3339_v43, %v7037_v51 }
 0x443   : > { %v7706_v49 = vrot.slane %v5856_v0, %v7037_v51  ;;  %v7709_v16 = vrot.slane %v3348_v22, %v7037_v51  ;;  %v3430_v18 = vcombine.high %v2118_v59, %v2118_v59  ;;  %v3437_v63 = vrot.slane %v2118_v59, %v7037_v51 }
 0x444   : > { %v4394_v47 = vcombine.low %v4385_v46, %v4392_v50  ;;  %v3418_v50 = vrot.slane %v3396_v4, %v7037_v51  ;;  %v4401_v46 = vrot.slane %v4393_v27, %v7037_v51  ;;  %v2119_v56 = vadd.f32 %v7690_v21, %v2072_v54 }
 0x445   : > { %v4900_v1 = vcombine.low %v3355_v60, %v3369_v37  ;;  %v5858_v44 = vcombine.high %v3355_v60, %v3369_v37  ;;  %v3404_v43 = vrot.slane %v3388_v39, %v7037_v51  ;;  %v7718_v0 = vrot.slane %v3397_v33, %v7037_v51 }
 0x446   : > { %v4408_v10 = vrot.slane %v4394_v47, %v7037_v51  ;;  %v3444_v30 = vrot.slane %v3430_v18, %v7037_v51  ;;  %v3445_v4 = vcombine.high %v3437_v63, %v3437_v63  ;;  %v8294_v47 = vcombine.low %v7476_v11, %v7479_v41 }
 0x447   : > { %v7726_v59 = vrot.slane %v3346_v9, %v7037_v51  ;;  %v7729_v54 = vrot.slane %v3395_v35, %v7037_v51  ;;  %v3479_v37 = vcombine.high %v2119_v56, %v2119_v56  ;;  %v3486_v39 = vrot.slane %v2119_v56, %v7037_v51 }
 0x448   : > { %v4409_v22 = vcombine.low %v4401_v46, %v4408_v10  ;;  %v4532_v27 = vrot.slane %v8294_v47, %v7037_v51  ;;  %v4949_v33 = vcombine.low %v3404_v43, %v3418_v50  ;;  %v5860_v60 = vcombine.high %v3404_v43, %v3418_v50  ;;  %v2075_v47 = vpop.xlane.xlu0 %2074 }
 0x449   : > { %v3446_v10 = vcombine.high %v3444_v30, %v3444_v30  ;;  %v8295_v46 = vcombine.high %v7476_v11, %v7479_v41  ;;  %v3467_v35 = vrot.slane %v3445_v4, %v7037_v51  ;;  %v4540_v56 = vcombine.low %v7524_v12, %v7530_v58 }
 0x44a   : > { %5332 = vperm.xlu1 %6348, %v4409_v22   ;;  %v7744_v50 = vrot.slane %v4900_v1, %v7037_v51  ;;  %v7747_v43 = vrot.slane %v5858_v44, %v7037_v51  ;;  %v3493_v4 = vrot.slane %v3479_v37, %v7037_v51  ;;  %v3494_v9 = vcombine.high %v3486_v39, %v3486_v39 }
 0x44b   : > { %v4539_v18 = vrot.slane %v8295_v46, %v7037_v51  ;;  %v3453_v46 = vrot.slane %v3437_v63, %v7037_v51  ;;  %v7756_v12 = vrot.slane %v4949_v33, %v7037_v51  ;;  %v7759_v58 = vrot.slane %v5860_v60, %v7037_v51 }
 0x44c   : > { %v7762_v44 = vrot.slane %v3444_v30, %v7037_v51  ;;  %v7765_v1 = vrot.slane %v3446_v10, %v7037_v51  ;;  %v4548_v63 = vrot.slane %v4540_v56, %v7037_v51  ;;  %v8298_v33 = vcombine.low %v7351_v2, %v7343_v23 }
 0x44d   : > { %v4541_v41 = vcombine.low %v4532_v27, %v4539_v18  ;;  %8296 = vst [vmem:[#allocation19_spill] sm:$0xff] %v7756_v12  ;;  %8297 = vst [vmem:[#allocation20_spill] sm:$0xff] %v7759_v58  ;;  %v4998_v27 = vcombine.low %v3453_v46, %v3467_v35  ;;  %v3502_v18 = vrot.slane %v3486_v39, %v7037_v51  ;;  %v2078_v39 = vpop.xlane.xlu1 %2077 }
 0x44e   : > { %v4336_v22 = vrot.slane %v8298_v33, %v7037_v51  ;;  %v8299_v30 = vcombine.high %v7351_v2, %v7343_v23  ;;  %v4344_v10 = vcombine.low %v7376_v61, %v7383_v40  ;;  %v2120_v11 = vadd.f32 %v7690_v21, %v2075_v47 }
 0x44f   : > { %v4555_v37 = vrot.slane %v4541_v41, %v7037_v51  ;;  %v5862_v12 = vcombine.high %v3453_v46, %v3467_v35  ;;  %v3495_v56 = vcombine.high %v3493_v4, %v3493_v4  ;;  %v7782_v41 = vrot.slane %v3493_v4, %v7037_v51 }
 0x450   : > { %v4343_v60 = vrot.slane %v8299_v30, %v7037_v51  ;;  %v3516_v58 = vrot.slane %v3494_v9, %v7037_v51  ;;  %v5000_v33 = vcombine.low %v7762_v44, %v7765_v1  ;;  %v3528_v2 = vcombine.high %v2120_v11, %v2120_v11 }
 0x451   : > { %v4556_v52 = vcombine.low %v4548_v63, %v4555_v37  ;;  %v3535_v23 = vrot.slane %v2120_v11, %v7037_v51  ;;  %v2121_v40 = vadd.f32 %v7690_v21, %v2078_v39  ;;  %v8300_v61 = vcombine.low %v7545_v31, %v7553_v45 }
 0x452   : > { %v4345_v6 = vcombine.low %v4336_v22, %v4343_v60  ;;  %v8301_v35 = vcombine.high %v7545_v31, %v7553_v45  ;;  %v4352_v46 = vrot.slane %v4344_v10, %v7037_v51  ;;  %v3542_v4 = vrot.slane %v3528_v2, %v7037_v51 }
 0x453   : > { %v4630_v47 = vrot.slane %v8300_v61, %v7037_v51  ;;  %5341 = vperm.xlu0 %6347, %v4556_v52   ;;  %v4638_v11 = vcombine.low %v7584_v13, %v7588_v28  ;;  %v7803_v63 = vrot.slane %v3495_v56, %v7037_v51  ;;  %v3543_v37 = vcombine.high %v3535_v23, %v3535_v23 }
 0x454   : > { %v4637_v9 = vrot.slane %v8301_v35, %v7037_v51  ;;  %v4359_v22 = vrot.slane %v4345_v6, %v7037_v51  ;;  %v3577_v30 = vcombine.high %v2121_v40, %v2121_v40  ;;  %v3584_v60 = vrot.slane %v2121_v40, %v7037_v51 }
 0x455   : > { %v5047_v52 = vcombine.low %v3502_v18, %v3516_v58  ;;  %v7809_v6 = vrot.slane %v4998_v27, %v7037_v51  ;;  %v5864_v39 = vcombine.high %v3502_v18, %v3516_v58  ;;  %v8302_v13 = vcombine.low %v7483_v57, %v7499_v26 }
 0x456   : > { %v4360_v45 = vcombine.low %v4352_v46, %v4359_v22  ;;  %v4639_v10 = vcombine.low %v4630_v47, %v4637_v9  ;;  %v3591_v2 = vrot.slane %v3577_v30, %v7037_v51  ;;  %v3544_v56 = vcombine.high %v3542_v4, %v3542_v4  ;;  %v2081_v46 = vpop.xlane.xlu0 %2080 }
 0x457   : > { %v4581_v28 = vrot.slane %v8302_v13, %v7037_v51  ;;  %v4646_v40 = vrot.slane %v4638_v11, %v7037_v51  ;;  %v8303_v47 = vcombine.high %v7483_v57, %v7499_v26  ;;  %v7823_v58 = vrot.slane %v5862_v12, %v7037_v51  ;;  %v2084_v57 = vpop.xlane.xlu1 %2083 }
 0x458   : > { %5329 = vperm.xlu1 %6348, %v4360_v45   ;;  %v4653_v61 = vrot.slane %v4639_v10, %v7037_v51  ;;  %v5049_v18 = vcombine.low %v7782_v41, %v7803_v63  ;;  %v3565_v35 = vrot.slane %v3543_v37, %v7037_v51  ;;  %v3592_v9 = vcombine.high %v3584_v60, %v3584_v60 }
 0x459   : > { %v4588_v27 = vrot.slane %v8303_v47, %v7037_v51  ;;  %v5865_v22 = vcombine.high %v7782_v41, %v7803_v63  ;;  %v7831_v11 = vrot.slane %v5047_v52, %v7037_v51  ;;  %v3593_v30 = vcombine.high %v3591_v2, %v3591_v2 }
 0x45a   : > { %v4654_v45 = vcombine.low %v4646_v40, %v4653_v61  ;;  %v7834_v26 = vrot.slane %v5864_v39, %v7037_v51  ;;  %v3551_v12 = vrot.slane %v3535_v23, %v7037_v51  ;;  %v7838_v10 = vrot.slane %v3542_v4, %v7037_v51 }
 0x45b   : > { %v4589_v37 = vcombine.low %v7537_v34, %v7540_v7  ;;  %v7843_v13 = vrot.slane %v3544_v56, %v7037_v51  ;;  %v3600_v52 = vrot.slane %v3584_v60, %v7037_v51  ;;  %v4590_v47 = vcombine.low %v4581_v28, %v4588_v27 }
 0x45c   : > { %5347 = vperm.xlu0 %6347, %v4654_v45   ;;  %v2122_v40 = vadd.f32 %v7690_v21, %v2081_v46  ;;  %v5096_v61 = vcombine.low %v3551_v12, %v3565_v35  ;;  %v5866_v39 = vcombine.high %v3551_v12, %v3565_v35  ;;  %v3614_v31 = vrot.slane %v3592_v9, %v7037_v51 }
 0x45d   : > { %v2123_v23 = vadd.f32 %v7690_v21, %v2084_v57  ;;  %v7850_v4 = vrot.slane %v3593_v30, %v7037_v51  ;;  %v4597_v34 = vrot.slane %v4589_v37, %v7037_v51  ;;  %v4604_v7 = vrot.slane %v4590_v47, %v7037_v51 }
 0x45e   : > { %v3626_v56 = vcombine.high %v2122_v40, %v2122_v40  ;;  %v3633_v60 = vrot.slane %v2122_v40, %v7037_v51  ;;  %v8304_v27 = vcombine.low %v7606_v55, %v7609_v20  ;;  %v8305_v46 = vcombine.high %v7606_v55, %v7609_v20 }
 0x45f   : > { %v3675_v45 = vcombine.high %v2123_v23, %v2123_v23  ;;  %v3682_v28 = vrot.slane %v2123_v23, %v7037_v51  ;;  %v4605_v9 = vcombine.low %v4597_v34, %v4604_v7  ;;  %v4736_v57 = vcombine.low %v7634_v42, %v7638_v32 }
 0x460   : > { %v4728_v35 = vrot.slane %v8304_v27, %v7037_v51  ;;  %v3640_v21 = vrot.slane %v3626_v56, %v7037_v51  ;;  %v4735_v30 = vrot.slane %v8305_v46, %v7037_v51  ;;  %v7868_v12 = vrot.slane %v3591_v2, %v7037_v51 }
 0x461   : > { %v5145_v37 = vcombine.low %v3600_v52, %v3614_v31  ;;  %v5868_v47 = vcombine.high %v3600_v52, %v3614_v31  ;;  %v3641_v40 = vcombine.high %v3633_v60, %v3633_v60  ;;  %v5098_v23 = vcombine.low %v7838_v10, %v7843_v13  ;;  %5344 = vperm.xlu1 %6348, %v4605_v9  }
 0x462   : > { %v5867_v34 = vcombine.high %v7838_v10, %v7843_v13  ;;  %v7875_v7 = vrot.slane %v5096_v61, %v7037_v51  ;;  %v4737_v55 = vcombine.low %v4728_v35, %v4735_v30  ;;  %v7878_v20 = vrot.slane %v5866_v39, %v7037_v51 }
 0x463   : > { %v3642_v42 = vcombine.high %v3640_v21, %v3640_v21  ;;  %v3689_v32 = vrot.slane %v3675_v45, %v7037_v51  ;;  %v3690_v2 = vcombine.high %v3682_v28, %v3682_v28  ;;  %v5147_v31 = vcombine.low %v7868_v12, %v7850_v4 }
 0x464   : > { %v7884_v52 = vrot.slane %v3641_v40, %v7037_v51  ;;  %v4744_v56 = vrot.slane %v4736_v57, %v7037_v51  ;;  %v4751_v61 = vrot.slane %v4737_v55, %v7037_v51  ;;  %v5869_v27 = vcombine.high %v7868_v12, %v7850_v4 }
 0x465   : > { %v7891_v39 = vrot.slane %v5145_v37, %v7037_v51  ;;  %v7894_v35 = vrot.slane %v5868_v47, %v7037_v51  ;;  %v7897_v45 = vrot.slane %v3633_v60, %v7037_v51  ;;  %v7900_v9 = vrot.slane %v3640_v21, %v7037_v51 }
 0x466   : > { %v7903_v46 = vrot.slane %v3682_v28, %v7037_v51  ;;  %v4752_v30 = vcombine.low %v4744_v56, %v4751_v61  ;;  %v8306_v57 = vcombine.low %v7549_v38, %v7563_v62  ;;  %v7910_v37 = vrot.slane %v3642_v42, %v7037_v51 }
 0x467   : > { %v3691_v47 = vcombine.high %v3689_v32, %v3689_v32  ;;  %v7913_v55 = vrot.slane %v3689_v32, %v7037_v51  ;;  %v7916_v60 = vrot.slane %v3690_v2, %v7037_v51  ;;  %v5870_v21 = vcombine.high %v7897_v45, %v7884_v52 }
 0x468   : > { %v4679_v40 = vrot.slane %v8306_v57, %v7037_v51  ;;  %5353 = vperm.xlu0 %6347, %v4752_v30   ;;  %v8307_v56 = vcombine.high %v7549_v38, %v7563_v62  ;;  %v4687_v61 = vcombine.low %v7599_v19, %v7603_v53  ;;  %v8308_v32 = vcombine.low %v7661_v15, %v7646_v29 }
 0x469   : > { %v8309_v57 = vcombine.high %v7661_v15, %v7646_v29  ;;  %v4834_v30 = vcombine.low %v7674_v24, %v7694_v17  ;;  %v8310_v38 = vcombine.low %v7612_v8, %v7615_v5  ;;  %v8311_v53 = vcombine.high %v7612_v8, %v7615_v5 }
 0x46a   : > { %v4686_v42 = vrot.slane %v8307_v56, %v7037_v51  ;;  %v4826_v2 = vrot.slane %v8308_v32, %v7037_v51  ;;  %v4695_v19 = vrot.slane %v4687_v61, %v7037_v51  ;;  %v4785_v29 = vcombine.low %v7655_v3, %v7658_v48 }
 0x46b   : > { %v4833_v28 = vrot.slane %v8309_v57, %v7037_v51  ;;  %v4777_v62 = vrot.slane %v8310_v38, %v7037_v51  ;;  %v4784_v32 = vrot.slane %v8311_v53, %v7037_v51  ;;  %v4842_v57 = vrot.slane %v4834_v30, %v7037_v51 }
 0x46c   : > { %v4688_v56 = vcombine.low %v4679_v40, %v4686_v42  ;;  %v8312_v24 = vcombine.low %v7726_v59, %v7709_v16  ;;  %v8313_v40 = vcombine.high %v7726_v59, %v7709_v16  ;;  %v4793_v5 = vrot.slane %v4785_v29, %v7037_v51 }
 0x46d   : > { %v4835_v15 = vcombine.low %v4826_v2, %v4833_v28  ;;  %v4786_v8 = vcombine.low %v4777_v62, %v4784_v32  ;;  %v4932_v3 = vcombine.low %v7744_v50, %v7747_v43  ;;  %v8314_v2 = vcombine.low %v7686_v36, %v7677_v25 }
 0x46e   : > { %v4924_v17 = vrot.slane %v8312_v24, %v7037_v51  ;;  %v4931_v42 = vrot.slane %v8313_v40, %v7037_v51  ;;  %v4702_v61 = vrot.slane %v4688_v56, %v7037_v51  ;;  %v8315_v16 = vcombine.high %v7686_v36, %v7677_v25 }
 0x46f   : > { %v4849_v48 = vrot.slane %v4835_v15, %v7037_v51  ;;  %v4875_v30 = vrot.slane %v8314_v2, %v7037_v51  ;;  %v4800_v62 = vrot.slane %v4786_v8, %v7037_v51  ;;  %v4940_v56 = vrot.slane %v4932_v3, %v7037_v51 }
 0x470   : > { %v4933_v28 = vcombine.low %v4924_v17, %v4931_v42  ;;  %v4882_v59 = vrot.slane %v8315_v16, %v7037_v51  ;;  %v4703_v38 = vcombine.low %v4695_v19, %v4702_v61  ;;  %v4883_v50 = vcombine.low %v7702_v14, %v7706_v49  ;;  %v8319_v61 = vld [vmem:[#allocation12_spill] sm:$0xff] }
 0x471   : > { %v4850_v43 = vcombine.low %v4842_v57, %v4849_v48  ;;  %v8316_v29 = vcombine.low %v7729_v54, %v7718_v0  ;;  %v7981_v25 = vrot.slane %v3691_v47, %v7037_v51  ;;  %v5243_v36 = vcombine.low %v7903_v46, %v7916_v60  ;;  %v8322_v48 = vld [vmem:[#allocation19_spill] sm:$0xff] }
 0x472   : > { %v4947_v53 = vrot.slane %v4933_v28, %v7037_v51  ;;  %v4884_v32 = vcombine.low %v4875_v30, %v4882_v59  ;;  %5350 = vperm.xlu1 %6348, %v4703_v38   ;;  %v4801_v19 = vcombine.low %v4793_v5, %v4800_v62  ;;  %v8317_v14 = vcombine.high %v7729_v54, %v7718_v0  ;;  %v8318_v54 = vld [vmem:[#allocation11_spill] sm:$0xff] }
 0x473   : > { %v4973_v15 = vrot.slane %v8316_v29, %v7037_v51  ;;  %5359 = vperm.xlu0 %6347, %v4850_v43   ;;  %v5071_v47 = vrot.slane %v5049_v18, %v7037_v51  ;;  %v5078_v17 = vrot.slane %v5865_v22, %v7037_v51  ;;  %v4891_v40 = vrot.slane %v4883_v50, %v7037_v51  ;;  %v8321_v18 = vld [vmem:[#allocation20_spill] sm:$0xff]  ;;  %v8325_v50 = vld [vmem:[#allocation13_spill] sm:$0xff] }
 0x474   : > { %v4980_v49 = vrot.slane %v8317_v14, %v7037_v51  ;;  %v4948_v57 = vcombine.low %v4940_v56, %v4947_v53  ;;  %v4898_v24 = vrot.slane %v4884_v32, %v7037_v51  ;;  %v5079_v0 = vcombine.low %v7831_v11, %v7834_v26 }
 0x475   : > { %v8320_v8 = vcombine.low %v8318_v54, %v8319_v61  ;;  %v5196_v3 = vcombine.low %v7900_v9, %v7910_v37  ;;  %v4981_v28 = vcombine.low %v8322_v48, %v8321_v18  ;;  %v5080_v2 = vcombine.low %v5071_v47, %v5078_v17 }
 0x476   : > { %v4982_v42 = vcombine.low %v4973_v15, %v4980_v49  ;;  %v8323_v41 = vcombine.high %v8318_v54, %v8319_v61  ;;  %v5871_v22 = vcombine.high %v7900_v9, %v7910_v37  ;;  %5356 = vperm.xlu1 %6348, %v4801_v19   ;;  %v4899_v11 = vcombine.low %v4891_v40, %v4898_v24  ;;  %v8329_v15 = vld [vmem:[#allocation16_spill] sm:$0xff]  ;;  %v8330_v19 = vld [vmem:[#allocation15_spill] sm:$0xff]  ;;  %v8331_v61 = vld [vmem:[#allocation18_spill] sm:$0xff] }
 0x477   : > { %v4434_v5 = vrot.slane %v8320_v8, %v7037_v51  ;;  %v5022_v26 = vrot.slane %v5000_v33, %v7037_v51  ;;  %v8324_v30 = vcombine.high %v7762_v44, %v7765_v1  ;;  %5365 = vperm.xlu0 %6347, %v4948_v57   ;;  %v5087_v38 = vrot.slane %v5079_v0, %v7037_v51  ;;  %v8326_v33 = vld [vmem:[#allocation14_spill] sm:$0xff]  ;;  %v8332_v8 = vld [vmem:[#allocation17_spill] sm:$0xff] }
 0x478   : > { %v4441_v63 = vrot.slane %v8323_v41, %v7037_v51  ;;  %v4996_v59 = vrot.slane %v4982_v42, %v7037_v51  ;;  %v5094_v62 = vrot.slane %v5080_v2, %v7037_v51  ;;  %v5030_v9 = vcombine.low %v7809_v6, %v7823_v58 }
 0x479   : > { %v5029_v16 = vrot.slane %v8324_v30, %v7037_v51  ;;  %v8327_v43 = vcombine.low %v8325_v50, %v8326_v33  ;;  %v8328_v44 = vcombine.high %v8325_v50, %v8326_v33  ;;  %v5872_v32 = vcombine.high %v7903_v46, %v7916_v60  ;;  %v5294_v33 = vpop.permute.xlu0 %5293 }
 0x47a   : > { %v4443_v37 = vcombine.low %v4434_v5, %v4441_v63  ;;  %v5245_v29 = vcombine.low %v7913_v55, %v7981_v25  ;;  %v4989_v6 = vrot.slane %v4981_v28, %v7037_v51  ;;  %v5095_v58 = vcombine.low %v5087_v38, %v5094_v62  ;;  %5362 = vperm.xlu1 %6348, %v4899_v11  }
 0x47b   : > { %v5031_v56 = vcombine.low %v5022_v26, %v5029_v16  ;;  %v4483_v53 = vrot.slane %v8327_v43, %v7037_v51  ;;  %v4490_v1 = vrot.slane %v8328_v44, %v7037_v51  ;;  %v4442_v14 = vcombine.low %v8330_v19, %v8329_v15 }
 0x47c   : > { %v5169_v57 = vrot.slane %v5147_v31, %v7037_v51  ;;  %v5176_v24 = vrot.slane %v5869_v27, %v7037_v51  ;;  %v4997_v47 = vcombine.low %v4989_v6, %v4996_v59  ;;  %5374 = vperm.xlu0 %6347, %v5095_v58   ;;  %v5038_v17 = vrot.slane %v5030_v9, %v7037_v51 }
 0x47d   : > { %v5045_v49 = vrot.slane %v5031_v56, %v7037_v51  ;;  %v5177_v40 = vcombine.low %v7891_v39, %v7894_v35  ;;  %v5120_v42 = vrot.slane %v5098_v23, %v7037_v51  ;;  %v4457_v0 = vrot.slane %v4443_v37, %v7037_v51  ;;  %v5297_v37 = vpop.permute.xlu1 %5296 }
 0x47e   : > { %v4492_v31 = vcombine.low %v4483_v53, %v4490_v1  ;;  %v5178_v54 = vcombine.low %v5169_v57, %v5176_v24  ;;  %v5127_v4 = vrot.slane %v5867_v34, %v7037_v51  ;;  %v5873_v12 = vcombine.high %v7913_v55, %v7981_v25  ;;  %5368 = vperm.xlu1 %6348, %v4997_v47   ;;  %v8334_v47 = vld [vmem:[#allocation6_spill] sm:$0xff] }
 0x47f   : > { %v5046_v27 = vcombine.low %v5038_v17, %v5045_v49  ;;  %v5218_v39 = vrot.slane %v5196_v3, %v7037_v51  ;;  %v5225_v35 = vrot.slane %v5871_v22, %v7037_v51  ;;  %v4450_v23 = vrot.slane %v4442_v14, %v7037_v51 }
 0x480   : > { %v4491_v5 = vcombine.low %v8332_v8, %v8331_v61  ;;  %v5192_v18 = vrot.slane %v5178_v54, %v7037_v51  ;;  %v5129_v48 = vcombine.low %v5120_v42, %v5127_v4  ;;  %v8333_v10 = vcombine.low %v7897_v45, %v7884_v52  ;;  %v8336_v4 = vld [vmem:[#allocation7_spill] sm:$0xff]  ;;  %v8338_v61 = vld [vmem:[#allocation10_spill] sm:$0xff] }
 0x481   : > { %v5211_v34 = vrot.slane %v5870_v21, %v7037_v51  ;;  %5371 = vperm.xlu0 %6347, %v5046_v27   ;;  %v5185_v55 = vrot.slane %v5177_v40, %v7037_v51  ;;  %v5128_v25 = vcombine.low %v7875_v7, %v7878_v20  ;;  %v4458_v3 = vcombine.low %v4450_v23, %v4457_v0  ;;  %v5300_v56 = vpop.permute.xlu1 %5299  ;;  %v8335_v0 = vld [vmem:[#allocation8_spill] sm:$0xff] }
 0x482   : > { %v5204_v13 = vrot.slane %v8333_v10, %v7037_v51  ;;  %v4506_v28 = vrot.slane %v4492_v31, %v7037_v51  ;;  %v5227_v2 = vcombine.low %v5218_v39, %v5225_v35  ;;  %v5143_v63 = vrot.slane %v5129_v48, %v7037_v51  ;;  %v8337_v39 = vld [vmem:[#allocation9_spill] sm:$0xff] }
 0x483   : > { %v5193_v41 = vcombine.low %v5185_v55, %v5192_v18  ;;  %v5267_v22 = vrot.slane %v5245_v29, %v7037_v51  ;;  %v5274_v11 = vrot.slane %v5873_v12, %v7037_v51  ;;  %5335 = vperm.xlu1 %6348, %v4458_v3   ;;  %v4499_v52 = vrot.slane %v4491_v5, %v7037_v51 }
 0x484   : > { %v5253_v45 = vrot.slane %v5243_v36, %v7037_v51  ;;  %v5260_v7 = vrot.slane %v5872_v32, %v7037_v51  ;;  %v5136_v20 = vrot.slane %v5128_v25, %v7037_v51  ;;  %v5226_v21 = vcombine.low %v5204_v13, %v5211_v34 }
 0x485   : > { %5380 = vperm.xlu0 %6347, %v5193_v41   ;;  %v4507_v26 = vcombine.low %v4499_v52, %v4506_v28  ;;  %v5241_v16 = vrot.slane %v5227_v2, %v7037_v51  ;;  %v5276_v59 = vcombine.low %v5267_v22, %v5274_v11  ;;  %v5303_v53 = vpop.permute.xlu0 %5302  ;;  %v5402_v17 = vadd.s32 4294967272, %v8334_v47 }
 0x486   : > { %v5144_v30 = vcombine.low %v5136_v20, %v5143_v63  ;;  %v5234_v38 = vrot.slane %v5226_v21, %v7037_v51  ;;  %v5275_v62 = vcombine.low %v5253_v45, %v5260_v7  ;;  %v5409_v40 = vadd.s32 4294967264, %v8334_v47 }
 0x487   : > { %5338 = vperm.xlu1 %6348, %v4507_v26   ;;  %v5290_v46 = vrot.slane %v5276_v59, %v7037_v51  ;;  %v5391_v31 = vrot.slane %v5294_v33, %v8335_v0  ;;  %v5405_v12 = vsub.s32 %v5402_v17, %v8336_v4  ;;  %v5416_v27 = vadd.s32 4294967256, %v8334_v47 }
 0x488   : > { %v5242_v9 = vcombine.low %v5234_v38, %v5241_v16  ;;  %v5283_v60 = vrot.slane %v5275_v62, %v7037_v51  ;;  %v5395_v23 = vrot.slane %v5297_v37, %v8337_v39  ;;  %v5400_v8 = vrot.slane %v5300_v56, %v8338_v61 }
 0x489   : > { %5377 = vperm.xlu0 %6347, %v5144_v30   ;;  %v5412_v5 = vsub.s32 %v5409_v40, %v8336_v4  ;;  %v5423_v18 = vadd.s32 4294967248, %v8334_v47  ;;  %v5430_v34 = vadd.s32 4294967240, %v8334_v47  ;;  %v5406_v3 = vrot.slane %v5303_v53, %v5405_v12 }
 0x48a   : > { %v5291_v36 = vcombine.low %v5283_v60, %v5290_v46  ;;  %v5396_v13 = vsel %vm1934_vm6, %v5395_v23, %v5391_v31  ;;  %v5419_v28 = vsub.s32 %v5416_v27, %v8336_v4  ;;  %v5437_v52 = vadd.s32 4294967232, %v8334_v47 }
 0x48b   : > { %v5401_v63 = vsel %vm1941_vm7, %v5400_v8, %v5396_v13  ;;  %v5426_v11 = vsub.s32 %v5423_v18, %v8336_v4  ;;  %v5433_v7 = vsub.s32 %v5430_v34, %v8336_v4  ;;  %v5444_v20 = vadd.s32 4294967224, %v8334_v47 }
 0x48c   : > { %v5408_v59 = vsel %vm5407_vm9, %v5406_v3, %v5401_v63  ;;  %v5440_v60 = vsub.s32 %v5437_v52, %v8336_v4  ;;  %v5465_v40 = vadd.s32 4294967200, %v8334_v47  ;;  %v5479_v31 = vadd.s32 4294967184, %v8334_v47 }
 0x48d   : > { %5383 = vperm.xlu0 %6347, %v5242_v9   ;;  %v5447_v37 = vsub.s32 %v5444_v20, %v8336_v4 }
 0x48f   : > { %v5306_v50 = vpop.permute.xlu1 %5305 }
 0x490   : > { %v5413_v22 = vrot.slane %v5306_v50, %v5412_v5 }
 0x491   : > { %5386 = vperm.xlu0 %6347, %v5291_v36   ;;  %v5451_v36 = vadd.s32 4294967216, %v8334_v47 }
 0x492   : > { %v8102_v1 = vpop.permute.xlu0 %5308  ;;  %v5415_v9 = vsel %vm5414_vm10, %v5413_v22, %v5408_v59 }
 0x493   : > { %v5420_v16 = vrot.slane %v8102_v1, %v5419_v28  ;;  %v5454_v17 = vsub.s32 %v5451_v36, %v8336_v4 }
 0x498   : > { %v8098_v43 = vpop.permute.xlu1 %5311 }
 0x499   : > { %v5427_v46 = vrot.slane %v8098_v43, %v5426_v11 }
 0x49e   : > { %v8106_v29 = vpop.permute.xlu0 %5314 }
 0x49f   : > { %v5434_v1 = vrot.slane %v8106_v29, %v5433_v7 }
 0x4a3   : > { %v8100_v44 = vpop.permute.xlu1 %5317 }
 0x4a7   : > { %v8110_v58 = vpop.permute.xlu0 %5320 }
 0x4b0   : > { %v8104_v32 = vpop.permute.xlu1 %5326 }
 0x4bb   : > { %v8108_v6 = vpop.permute.xlu1 %5323 }
 0x4bc   : > { %v5455_v23 = vrot.slane %v8108_v6, %v5454_v17 }
 0x4c5   : > { %v8112_v15 = vpop.permute.xlu1 %5332 }
 0x4ce   : > { %v5342_v19 = vpop.permute.xlu0 %5341 }
 0x4cf   : > { %v5496_v48 = vrot.slane %v5342_v19, %v8335_v0  ;;  %v5422_v19 = vsel %vm5421_vm11, %v5420_v16, %v5415_v9 }
 0x4d3   : > { %v8114_v14 = vpop.permute.xlu1 %5329 }
 0x4d7   : > { %v5348_v49 = vpop.permute.xlu0 %5347 }
 0x4d8   : > { %v5505_v55 = vrot.slane %v5348_v49, %v8338_v61  ;;  %v5468_v61 = vsub.s32 %v5465_v40, %v8336_v4 }
 0x4da   : > { %v5469_v3 = vrot.slane %v8114_v14, %v5468_v61 }
 0x4dc   : > { %v5345_v57 = vpop.permute.xlu1 %5344 }
 0x4dd   : > { %v5500_v35 = vrot.slane %v5345_v57, %v8337_v39  ;;  %v5429_v57 = vsel %vm5428_vm12, %v5427_v46, %v5422_v19 }
 0x4de   : > { %v5436_v27 = vsel %vm5435_vm13, %v5434_v1, %v5429_v57 }
 0x4df   : > { %v5501_v2 = vsel %vm1934_vm6, %v5500_v35, %v5496_v48  ;;  %v5472_v48 = vadd.s32 4294967192, %v8334_v47 }
 0x4e0   : > { %v5506_v26 = vsel %vm1941_vm7, %v5505_v55, %v5501_v2  ;;  %v5482_v55 = vsub.s32 %v5479_v31, %v8336_v4 }
 0x4e3   : > { %v5354_v24 = vpop.permute.xlu0 %5353 }
 0x4e4   : > { %v5515_v21 = vrot.slane %v5354_v24, %v5412_v5  ;;  %v5441_v24 = vrot.slane %v8100_v44, %v5440_v60 }
 0x4e6   : > { %v5443_v35 = vsel %vm5442_vm14, %v5441_v24, %v5436_v27 }
 0x4ed   : > { %v5351_v42 = vpop.permute.xlu1 %5350 }
 0x4ee   : > { %v5360_v54 = vpop.permute.xlu0 %5359  ;;  %v5510_v41 = vrot.slane %v5351_v42, %v5405_v12  ;;  %v5458_v42 = vadd.s32 4294967208, %v8334_v47  ;;  %v5448_v12 = vrot.slane %v8110_v58, %v5447_v37  ;;  %v5486_v58 = vadd.s32 4294967176, %v8334_v47 }
 0x4ef   : > { %v5525_v56 = vrot.slane %v5360_v54, %v5426_v11  ;;  %v5475_v47 = vsub.s32 %v5472_v48, %v8336_v4 }
 0x4f0   : > { %v5511_v38 = vsel %vm5407_vm9, %v5510_v41, %v5506_v26  ;;  %v5461_v18 = vsub.s32 %v5458_v42, %v8336_v4  ;;  %v5450_v34 = vsel %vm5449_vm15, %v5448_v12, %v5443_v35  ;;  %v5489_v22 = vsub.s32 %v5486_v58, %v8336_v4 }
 0x4f1   : > { %v5357_v10 = vpop.permute.xlu1 %5356  ;;  %v5516_v50 = vsel %vm5414_vm10, %v5515_v21, %v5511_v38  ;;  %v5476_v26 = vrot.slane %v8112_v15, %v5475_v47 }
 0x4f2   : > { %v8130_v25 = vpop.permute.xlu0 %5365  ;;  %v5520_v62 = vrot.slane %v5357_v10, %v5419_v28  ;;  %v5462_v41 = vrot.slane %v8104_v32, %v5461_v18 }
 0x4f3   : > { %v5535_v0 = vrot.slane %v8130_v25, %v5440_v60  ;;  %v5457_v25 = vsel %vm5456_vm0, %v5455_v23, %v5450_v34 }
 0x4f4   : > { %v5521_v49 = vsel %vm5421_vm11, %v5520_v62, %v5516_v50 }
 0x4f5   : > { %v5363_v45 = vpop.permute.xlu1 %5362  ;;  %v5526_v29 = vsel %vm5428_vm12, %v5525_v56, %v5521_v49  ;;  %v8339_v56 = vlaneseq }
 0x4f6   : > { %v5530_v43 = vrot.slane %v5363_v45, %v5433_v7  ;;  %v5464_v45 = vsel %vm5463_vm1, %v5462_v41, %v5457_v25 }
 0x4f7   : > { %v8140_v30 = vpop.permute.xlu0 %5374  ;;  %v5471_v14 = vsel %vm5470_vm2, %v5469_v3, %v5464_v45  ;;  %vm5590_vm6 = vcmp.lt.s32.totalorder %v8339_v56, 256 }
 0x4f8   : > { %v5531_v44 = vsel %vm5435_vm13, %v5530_v43, %v5526_v29  ;;  %v5550_v63 = vrot.slane %v8140_v30, %v5461_v18  ;;  %v5478_v59 = vsel %vm5477_vm3, %v5476_v26, %v5471_v14 }
 0x4f9   : > { %v5369_v33 = vpop.permute.xlu1 %5368  ;;  %v5536_v10 = vsel %vm5442_vm14, %v5535_v0, %v5531_v44 }
 0x4fa   : > { %v5540_v39 = vrot.slane %v5369_v33, %v5447_v37 }
 0x4fc   : > { %v5372_v53 = vpop.permute.xlu0 %5371  ;;  %v5541_v6 = vsel %vm5449_vm15, %v5540_v39, %v5536_v10 }
 0x4fd   : > { %v5545_v8 = vrot.slane %v5372_v53, %v5454_v17 }
 0x4fe   : > { %v5336_v5 = vpop.permute.xlu1 %5335 }
 0x4ff   : > { %v5546_v28 = vsel %vm5456_vm0, %v5545_v8, %v5541_v6  ;;  %v5483_v20 = vrot.slane %v5336_v5, %v5482_v55 }
 0x500   : > { %v5381_v54 = vpop.permute.xlu0 %5380  ;;  %v5551_v7 = vsel %vm5463_vm1, %v5550_v63, %v5546_v28 }
 0x501   : > { %v5560_v30 = vrot.slane %v5381_v54, %v5475_v47  ;;  %v5485_v9 = vsel %vm5484_vm4, %v5483_v20, %v5478_v59 }
 0x502   : > { %v5339_v11 = vpop.permute.xlu1 %5338 }
 0x503   : > { %v5490_v16 = vrot.slane %v5339_v11, %v5489_v22 }
 0x504   : > { %v5378_v13 = vpop.permute.xlu0 %5377 }
 0x505   : > { %v5555_v2 = vrot.slane %v5378_v13, %v5468_v61  ;;  %v5492_v60 = vsel %vm5491_vm5, %v5490_v16, %v5485_v9 }
 0x507   : > { %v5556_v32 = vsel %vm5470_vm2, %v5555_v2, %v5551_v7 }
 0x508   : > { %v5384_v52 = vpop.permute.xlu0 %5383  ;;  %v5561_v38 = vsel %vm5477_vm3, %v5560_v30, %v5556_v32 }
 0x509   : > { %v5565_v21 = vrot.slane %v5384_v52, %v5482_v55 }
 0x50b   : > { %v5566_v46 = vsel %vm5484_vm4, %v5565_v21, %v5561_v38 }
 0x50c   : > { %v5387_v4 = vpop.permute.xlu0 %5386 }
 0x50d   : > { %v5570_v62 = vrot.slane %v5387_v4, %v5489_v22 }
 0x50f   : > { %v5571_v36 = vsel %vm5491_vm5, %v5570_v62, %v5566_v46 }
 0x510   : > { %v5572_v37 = vcombine.low %v5492_v60, %v5571_v36 }
 0x512   : > { %v5579_v15 = vrot.slane %v5572_v37, %v7037_v51 }
 0x514   : > { %v5586_v50 = vrot.slane %v5579_v15, %v7037_v51 }
 0x516   : > { %5592 = vst.msk [vmem:[%s382_s25] sm:$0x3] %vm5590_vm6, %v5586_v50 }
 0x517   : > { %6363 = shalt.err (!%p6360_p3)
}
 0x518   : > { %s6364_s12 = scalar_lea.hbm %s5606_s13, 32  ;;  %s6368_s25 = scalar_lea.hbm %s8237_s11, 64 }
 0x519   : > { %p6365_p4 = scmp.ne.s32.totalorder %s5606_s13, %s6364_s12  ;;  %p6369_p9 = scmp.lt.s32.totalorder %s5606_s13, %s8237_s11 }
 0x51a   : > { %p6370_p10 = scmp.lt.s32.totalorder %s6368_s25, %s6364_s12 }
 0x51b   : > { %p6366_p7 = pnand %p6365_p4, %p6513_p5 }
 0x51c   : > { %p6371_p11 = por %p6370_p10, %p6369_p9 }
 0x51d   : > { %p6367_p8 = pneg %p6366_p7 }
 0x51f   : > { %p6372_p12 = pnand %p6371_p11, %p6367_p8 }
 0x521   : > { %6375 = shalt.err (!%p6372_p12)
}
 0x522   : > { %6306 = dma.vmem_to_hbm [thread:$0]  (%p6513_p5), %s5609_s30, 32, %s5606_s13, %s5594_s14  }
 0x523 PF: > { %p6312_p13 = scmp.ge.s32.totalorder %s6410_s22, 2  ;;  %s5620_s16 = sand.u32 1, %s6398_s19  }
 0x524   : > { %s5621_s17 = scalar_lea.sflag [#allocation4], %s5620_s16 }
 0x525   : > { %p6309_p0 = pnand %p6312_p13, %p6517_p6 }
 0x527   : > { %p6310_p1 = pneg %p6309_p0 }
 0x529   : > { %6393 = dma.done.wait (%p6310_p1), %s5621_s17, 32  }
 0x52a   : > { %6395 = vsyncadd (%p6310_p1), %s5621_s17, 4294967264  ;;  %p23_p2 = scmp.ge.s32.totalorder %s6501_s24, 4   ;;  %s8340_s19 = smov %s6402_s20 }
 0x52b   : > { %s8341_s20 = smov %s6406_s21  ;;  %s8342_s21 = smov %s6511_s27 }
 0x52c   : > { %s8343_s22 = smov %s6501_s24  ;;  %25 = sbr.rel (!%p23_p2) target bundleno = 6 (0x6), region = 99 }
 0x531   :  { %5626 = vsyncpa [#allocation4], 1 }
 0x532   :  { %5628 = vsyncpa [#allocation4 + $0x1], 1 }

</bundles_post_ra>
